<compile_context>
chip_gen: v6e
topology: v6e:2x2x1
jax: 0.10.0
libtpu: 0.0.40
codegen_flags: <defaults>
</compile_context>

<pallas_src>
import functools

import jax
import jax.numpy as jnp
import numpy as np
from jax import lax
from jax.experimental import pallas as pl
from jax.experimental.pallas import tpu as pltpu


# ----------------------------- Pallas kernel --------------------------------

def _fused_forward_kernel(*refs, n_layers, relu_flags):
    """refs = (x_ref, w0, w1, ..., w_{L-1}, o_ref).

    Chains L matmuls (bias already folded into each W, optional ReLU) entirely
    in VMEM / vregs.  Weights are bf16; accumulation is f32 on the MXU."""
    x_ref = refs[0]
    o_ref = refs[-1]
    h = x_ref[...]                                     # (Bp, K0+1), bf16
    for i in range(n_layers):                          # static unroll
        w = refs[1 + i][...]                           # (K+1, N[+1]), bf16
        h = jnp.dot(h.astype(jnp.bfloat16), w,
                    preferred_element_type=jnp.float32)
        if relu_flags[i]:
            h = jnp.maximum(h, 0.0)
    o_ref[...] = h.astype(o_ref.dtype)


def fused_forward(x, weights, relu_flags):
    """One pallas_call running the whole layer chain.

    x: (Bp, K0+1) bf16 (batch padded to a multiple of 8, trailing ones column).
    weights: list of bf16 (K+1, N) matrices with bias folded into the last row.
    """
    B, K0 = x.shape
    n_layers = len(weights)
    n_out = int(weights[-1].shape[1])

    kernel = functools.partial(_fused_forward_kernel,
                               n_layers=n_layers,
                               relu_flags=tuple(relu_flags))

    in_specs = [pl.BlockSpec((B, K0), lambda i: (0, 0))]
    for w in weights:
        K, N = w.shape
        in_specs.append(pl.BlockSpec((K, N), lambda i: (0, 0)))   # fully resident

    flops = 2 * B * sum(int(w.shape[0]) * int(w.shape[1]) for w in weights)
    bytes_accessed = (int(x.size) * x.dtype.itemsize
                      + sum(int(w.size) * w.dtype.itemsize for w in weights)
                      + B * n_out * 4)

    return pl.pallas_call(
        kernel,
        out_shape=jax.ShapeDtypeStruct((B, n_out), jnp.float32),
        grid=(1,),
        in_specs=in_specs,
        out_specs=pl.BlockSpec((B, n_out), lambda i: (0, 0)),
        compiler_params=pltpu.CompilerParams(
            dimension_semantics=("arbitrary",),
            vmem_limit_bytes=32 * 1024 * 1024),
        cost_estimate=pl.CostEstimate(flops=flops, transcendentals=0,
                                      bytes_accessed=bytes_accessed),
    )(x, *weights)


# -------------------- model forward (jit-friendly wrapper) -------------------

def two_head_dcnn_forward(weights, x, *, relu_flags, head_channels,
                          out_d2, out_d3, head_pad):
    """weights/x are traced arrays; everything else is static (bound via partial)."""
    B = x.shape[0]
    B_pad = ((B + 7) // 8) * 8                         # sublane-align the batch
    head_cols = head_channels * out_d2 * out_d3

    # Augment with the ones column (drives the folded biases) and pad rows.
    x_aug = jnp.concatenate([x, jnp.ones((B, 1), x.dtype)], axis=1)
    x_aug = jnp.pad(x_aug, ((0, B_pad - B), (0, 0))).astype(jnp.bfloat16)

    flat = fused_forward(x_aug, weights, relu_flags)   # (B_pad, 2*head_pad) f32
    flat = flat[:B]
    out1 = flat[:, :head_cols].reshape(B, head_channels, out_d2, out_d3)
    out2 = flat[:, head_pad:head_pad + head_cols].reshape(
        B, head_channels, out_d2, out_d3)
    return out1, out2


# --------------- host-side weight preprocessing (outside jit) ----------------

def _deconv_to_matrix(w_t, bias, stride, padding, in_d2, in_d3):
    """ConvTranspose2d (dilation=1, output_padding=0) as a dense matrix acting
    on row-major (C, d2, d3) flattened activations: out_flat = in_flat @ M + b.

    w_t: (Cin, Cout, kH, kW).  Handles any padding (including p > k-1) exactly."""
    # TODO(synk): output_padding != 0 not implemented (the module never sets it).
    w_t = np.asarray(w_t, np.float32)
    cin, cout, kh, kw = w_t.shape
    out_d2 = (in_d2 - 1) * stride - 2 * padding + kh
    out_d3 = (in_d3 - 1) * stride - 2 * padding + kw
    hw = out_d2 * out_d3
    M = np.zeros((cin * in_d2 * in_d3, cout * hw), np.float32)
    co_base = np.arange(cout) * hw
    for ci in range(cin):
        for i2 in range(in_d2):
            for i3 in range(in_d3):
                row = (ci * in_d2 + i2) * in_d3 + i3
                for a in range(kh):
                    o2 = i2 * stride + a - padding
                    if o2 < 0 or o2 >= out_d2:
                        continue
                    for b in range(kw):
                        o3 = i3 * stride + b - padding
                        if o3 < 0 or o3 >= out_d3:
                            continue
                        M[row, co_base + (o2 * out_d3 + o3)] += w_t[ci, :, a, b]
    b_flat = np.repeat(np.asarray(bias, np.float32), hw)
    return M, b_flat, out_d2, out_d3


def _augment(W, b, add_ones_col):
    """Fold bias into W (extra row) and optionally append the identity column
    that propagates the ones column of the activation to the next layer."""
    W = np.asarray(W, np.float32)
    b = np.asarray(b, np.float32).reshape(-1)
    K, N = W.shape
    cols = N + (1 if add_ones_col else 0)
    A = np.zeros((K + 1, cols), np.float32)
    A[:K, :N] = W
    A[K, :N] = b
    if add_ones_col:
        A[K, N] = 1.0
    return A


def build_pallas_layers(raw, deconv_c, deconv_d2, deconv_d3):
    """Lower the whole network to a flat chain of bf16 (K+1, N[+1]) matmuls."""
    mats, relu = [], []
    for w, b in raw["fc"]:
        mats.append(_augment(np.asarray(w), np.asarray(b), add_ones_col=True))
        relu.append(True)
    w, b = raw["last_fc"]
    mats.append(_augment(np.asarray(w), np.asarray(b), add_ones_col=True))
    relu.append(True)

    d2, d3 = deconv_d2, deconv_d3
    for (w_t, bb, st, pd) in raw["deconv"]:
        M, bvec, d2, d3 = _deconv_to_matrix(np.asarray(w_t), np.asarray(bb),
                                            st, pd, d2, d3)
        mats.append(_augment(M, bvec, add_ones_col=True))
        relu.append(True)

    # Merge the two output heads into one matmul (identical input, concat Cout),
    # padding each head's column block up to a multiple of 128 lanes so the
    # writeback is unmasked and the head-2 split sits on a lane boundary.
    w1, b1, s1, p1 = raw["head1"]
    w2, b2, s2, p2 = raw["head2"]
    M1, bv1, od2, od3 = _deconv_to_matrix(np.asarray(w1), np.asarray(b1), s1, p1, d2, d3)
    M2, bv2, _, _ = _deconv_to_matrix(np.asarray(w2), np.asarray(b2), s2, p2, d2, d3)
    K, n_head = M1.shape
    head_pad = ((n_head + 127) // 128) * 128
    Wf = np.zeros((K + 1, 2 * head_pad), np.float32)
    Wf[:K, :n_head] = M1
    Wf[K, :n_head] = bv1
    Wf[:K, head_pad:head_pad + n_head] = M2
    Wf[K, head_pad:head_pad + n_head] = bv2
    mats.append(Wf)
    relu.append(False)                                  # identity output activation

    weights = [jnp.asarray(m, jnp.bfloat16) for m in mats]
    head_channels = int(np.asarray(w1).shape[1])
    return weights, tuple(relu), (head_channels, od2, od3, head_pad)


# --------------------------- pure-JAX reference ------------------------------

def _ref_conv_transpose(x_nchw, w_t, b, stride, padding):
    cin, cout, kh, kw = w_t.shape
    w_oihw = jnp.transpose(w_t[:, :, ::-1, ::-1], (1, 0, 2, 3))
    out = lax.conv_general_dilated(
        x_nchw, w_oihw, window_strides=(1, 1),
        padding=[(kh - 1 - padding, kh - 1 - padding),
                 (kw - 1 - padding, kw - 1 - padding)],
        lhs_dilation=(stride, stride),
        dimension_numbers=("NCHW", "OIHW", "NCHW"))
    return out + b.reshape(1, cout, 1, 1)


def ref_forward(raw, x, deconv_input_shape):
    h = x
    for w, b in raw["fc"]:
        h = jnp.maximum(h @ w + b, 0.0)
    w, b = raw["last_fc"]
    h = jnp.maximum(h @ w + b, 0.0)
    C, d2, d3 = deconv_input_shape
    h = h.reshape(-1, C, d2, d3)
    for (wt, bb, s, p) in raw["deconv"]:
        h = jnp.maximum(_ref_conv_transpose(h, wt, bb, s, p), 0.0)
    o1 = _ref_conv_transpose(h, *raw["head1"])
    o2 = _ref_conv_transpose(h, *raw["head2"])
    return o1, o2


# ----------------------------------- main ------------------------------------

if __name__ == "__main__":
    # Module hyperparameters (small, deterministic).  batch_norm_* default False.
    # TODO(synk): batch_norm_fc / batch_norm_deconv = True branches not implemented.
    fc_input_size = 16
    hidden_sizes = [32, 32]
    deconv_input_width, deconv_input_height, deconv_input_channels = 3, 3, 8
    kernel_sizes, n_channels, strides, paddings = [3], [16], [2], [1]
    deconv_output_kernel_size, deconv_output_strides, deconv_output_channels = 3, 2, 4
    init_w = 1e-3
    batch = 2

    key = jax.random.PRNGKey(0)

    def uni(k, shape, lim):
        return jax.random.uniform(k, shape, jnp.float32, -lim, lim)

    # ---- raw (PyTorch-layout) parameters: used by the pure-JAX reference ----
    raw = {"fc": [], "deconv": []}
    in_size = fc_input_size
    for hs in hidden_sizes:
        key, k1, k2 = jax.random.split(key, 3)
        raw["fc"].append((uni(k1, (in_size, hs), init_w), uni(k2, (hs,), init_w)))
        in_size = hs
    deconv_input_size = deconv_input_channels * deconv_input_height * deconv_input_width
    key, k1, k2 = jax.random.split(key, 3)
    raw["last_fc"] = (uni(k1, (in_size, deconv_input_size), init_w),
                      uni(k2, (deconv_input_size,), init_w))

    cin = deconv_input_channels
    for cout, ks, st, pd in zip(n_channels, kernel_sizes, strides, paddings):
        key, k1 = jax.random.split(key)
        fan_in, fan_out = cout * ks * ks, cin * ks * ks   # xavier on ConvT weight
        lim = float(np.sqrt(6.0 / (fan_in + fan_out)))
        raw["deconv"].append((uni(k1, (cin, cout, ks, ks), lim),
                              jnp.zeros((cout,), jnp.float32), st, pd))
        cin = cout
    ks = deconv_output_kernel_size
    fan_in = deconv_output_channels * ks * ks
    fan_out = cin * ks * ks
    lim = float(np.sqrt(6.0 / (fan_in + fan_out)))
    key, k1, k2 = jax.random.split(key, 3)
    raw["head1"] = (uni(k1, (cin, deconv_output_channels, ks, ks), lim),
                    jnp.zeros((deconv_output_channels,), jnp.float32),
                    deconv_output_strides, 0)
    raw["head2"] = (uni(k2, (cin, deconv_output_channels, ks, ks), lim),
                    jnp.zeros((deconv_output_channels,), jnp.float32),
                    deconv_output_strides, 0)

    # ---- host-side preprocessing: lower the whole net to a bf16 matmul chain ----
    weights, relu_flags, (head_channels, out_d2, out_d3, head_pad) = \
        build_pallas_layers(raw, deconv_input_channels,
                            deconv_input_width, deconv_input_height)

    # Static architecture info bound via partial (NOT traced pytree leaves).
    fwd = jax.jit(functools.partial(two_head_dcnn_forward,
                                    relu_flags=relu_flags,
                                    head_channels=head_channels,
                                    out_d2=out_d2, out_d3=out_d3,
                                    head_pad=head_pad))

    key, kx = jax.random.split(key)
    x = jax.random.normal(kx, (batch, fc_input_size), jnp.float32)

    out1, out2 = fwd(weights, x)
    out1 = jax.block_until_ready(out1)
    out2 = jax.block_until_ready(out2)

    ref1, ref2 = ref_forward(
        raw, x, (deconv_input_channels, deconv_input_width, deconv_input_height))
    # bf16 weights + f32 accumulation: tolerances relaxed vs the all-f32 version.
    np.testing.assert_allclose(np.asarray(out1), np.asarray(ref1), rtol=5e-2, atol=2e-4)
    np.testing.assert_allclose(np.asarray(out2), np.asarray(ref2), rtol=5e-2, atol=2e-4)
    assert out1.shape == (batch, deconv_output_channels, 11, 11)
    assert out2.shape == (batch, deconv_output_channels, 11, 11)

    print("KERNEL_OK")
</pallas_src>

<mosaic_0001>
module attributes {stable_mosaic.version = 11 : i64} {
  func.func @_fused_forward_kernel(%arg0: i32, %arg1: memref<8x17xbf16, #tpu.memory_space<vmem>>, %arg2: memref<17x33xbf16, #tpu.memory_space<vmem>>, %arg3: memref<33x33xbf16, #tpu.memory_space<vmem>>, %arg4: memref<33x73xbf16, #tpu.memory_space<vmem>>, %arg5: memref<73x401xbf16, #tpu.memory_space<vmem>>, %arg6: memref<401x1024xbf16, #tpu.memory_space<vmem>>, %arg7: memref<8x1024xf32, #tpu.memory_space<vmem>>) attributes {dimension_semantics = [#tpu.dimension_semantics<arbitrary>], iteration_bounds = array<i64: 1>, scalar_prefetch = 0 : i64, scratch_operands = 0 : i64, tpu.core_type = #tpu.core_type<tc>, window_params = [{pipeline_mode = #tpu.pipeline_mode<synchronous>, transform_indices = @transform_0, window_bounds = array<i64: 8, 17>}, {pipeline_mode = #tpu.pipeline_mode<synchronous>, transform_indices = @transform_1, window_bounds = array<i64: 17, 33>}, {pipeline_mode = #tpu.pipeline_mode<synchronous>, transform_indices = @transform_2, window_bounds = array<i64: 33, 33>}, {pipeline_mode = #tpu.pipeline_mode<synchronous>, transform_indices = @transform_3, window_bounds = array<i64: 33, 73>}, {pipeline_mode = #tpu.pipeline_mode<synchronous>, transform_indices = @transform_4, window_bounds = array<i64: 73, 401>}, {pipeline_mode = #tpu.pipeline_mode<synchronous>, transform_indices = @transform_5, window_bounds = array<i64: 401, 1024>}, {pipeline_mode = #tpu.pipeline_mode<synchronous>, transform_indices = @transform_6, window_bounds = array<i64: 8, 1024>}]} {
    %c0 = arith.constant 0 : index
    %c0_0 = arith.constant 0 : index
    %0 = vector.load %arg1[%c0, %c0_0] : memref<8x17xbf16, #tpu.memory_space<vmem>>, vector<8x17xbf16>
    %c0_1 = arith.constant 0 : index
    %c0_2 = arith.constant 0 : index
    %1 = vector.load %arg2[%c0_1, %c0_2] : memref<17x33xbf16, #tpu.memory_space<vmem>>, vector<17x33xbf16>
    %cst = arith.constant dense<0.000000e+00> : vector<8x33xf32>
    %2 = tpu.matmul %0, %1, %cst {dimension_numbers = #tpu.dot_dimension_numbers<[1], [0], [0], [1], [0, 0, 1, 1], [], []>} : vector<8x17xbf16>, vector<17x33xbf16>, vector<8x33xf32> -> vector<8x33xf32>
    %cst_3 = arith.constant 0.000000e+00 : f32
    %3 = vector.broadcast %cst_3 : f32 to vector<8x33xf32>
    %4 = arith.maximumf %2, %3 : vector<8x33xf32>
    %c0_4 = arith.constant 0 : index
    %c0_5 = arith.constant 0 : index
    %5 = vector.load %arg3[%c0_4, %c0_5] : memref<33x33xbf16, #tpu.memory_space<vmem>>, vector<33x33xbf16>
    %6 = arith.truncf %4 : vector<8x33xf32> to vector<8x33xbf16>
    %cst_6 = arith.constant dense<0.000000e+00> : vector<8x33xf32>
    %7 = tpu.matmul %6, %5, %cst_6 {dimension_numbers = #tpu.dot_dimension_numbers<[1], [0], [0], [1], [0, 0, 1, 1], [], []>} : vector<8x33xbf16>, vector<33x33xbf16>, vector<8x33xf32> -> vector<8x33xf32>
    %cst_7 = arith.constant 0.000000e+00 : f32
    %8 = vector.broadcast %cst_7 : f32 to vector<8x33xf32>
    %9 = arith.maximumf %7, %8 : vector<8x33xf32>
    %c0_8 = arith.constant 0 : index
    %c0_9 = arith.constant 0 : index
    %10 = vector.load %arg4[%c0_8, %c0_9] : memref<33x73xbf16, #tpu.memory_space<vmem>>, vector<33x73xbf16>
    %11 = arith.truncf %9 : vector<8x33xf32> to vector<8x33xbf16>
    %cst_10 = arith.constant dense<0.000000e+00> : vector<8x73xf32>
    %12 = tpu.matmul %11, %10, %cst_10 {dimension_numbers = #tpu.dot_dimension_numbers<[1], [0], [0], [1], [0, 0, 1, 1], [], []>} : vector<8x33xbf16>, vector<33x73xbf16>, vector<8x73xf32> -> vector<8x73xf32>
    %cst_11 = arith.constant 0.000000e+00 : f32
    %13 = vector.broadcast %cst_11 : f32 to vector<8x73xf32>
    %14 = arith.maximumf %12, %13 : vector<8x73xf32>
    %c0_12 = arith.constant 0 : index
    %c0_13 = arith.constant 0 : index
    %15 = vector.load %arg5[%c0_12, %c0_13] : memref<73x401xbf16, #tpu.memory_space<vmem>>, vector<73x401xbf16>
    %16 = arith.truncf %14 : vector<8x73xf32> to vector<8x73xbf16>
    %cst_14 = arith.constant dense<0.000000e+00> : vector<8x401xf32>
    %17 = tpu.matmul %16, %15, %cst_14 {dimension_numbers = #tpu.dot_dimension_numbers<[1], [0], [0], [1], [0, 0, 1, 1], [], []>} : vector<8x73xbf16>, vector<73x401xbf16>, vector<8x401xf32> -> vector<8x401xf32>
    %cst_15 = arith.constant 0.000000e+00 : f32
    %18 = vector.broadcast %cst_15 : f32 to vector<8x401xf32>
    %19 = arith.maximumf %17, %18 : vector<8x401xf32>
    %c0_16 = arith.constant 0 : index
    %c0_17 = arith.constant 0 : index
    %20 = vector.load %arg6[%c0_16, %c0_17] : memref<401x1024xbf16, #tpu.memory_space<vmem>>, vector<401x1024xbf16>
    %21 = arith.truncf %19 : vector<8x401xf32> to vector<8x401xbf16>
    %cst_18 = arith.constant dense<0.000000e+00> : vector<8x1024xf32>
    %22 = tpu.matmul %21, %20, %cst_18 {dimension_numbers = #tpu.dot_dimension_numbers<[1], [0], [0], [1], [0, 0, 1, 1], [], []>} : vector<8x401xbf16>, vector<401x1024xbf16>, vector<8x1024xf32> -> vector<8x1024xf32>
    %c0_19 = arith.constant 0 : index
    %c0_20 = arith.constant 0 : index
    %23 = vector.load %arg7[%c0_19, %c0_20] : memref<8x1024xf32, #tpu.memory_space<vmem>>, vector<8x1024xf32>
    tpu.vector_store %arg7[%c0_19, %c0_20], %22 {strides = array<i32>} : memref<8x1024xf32, #tpu.memory_space<vmem>>, vector<8x1024xf32>,
    return
  }
  func.func @transform_0(%arg0: i32) -> (i32, i32) {
    %c0_i32 = arith.constant 0 : i32
    %c0_i32_0 = arith.constant 0 : i32
    %c0_i32_1 = arith.constant 0 : i32
    return %c0_i32, %c0_i32_0 : i32, i32
  }
  func.func @transform_1(%arg0: i32) -> (i32, i32) {
    %c0_i32 = arith.constant 0 : i32
    %c0_i32_0 = arith.constant 0 : i32
    %c0_i32_1 = arith.constant 0 : i32
    return %c0_i32, %c0_i32_0 : i32, i32
  }
  func.func @transform_2(%arg0: i32) -> (i32, i32) {
    %c0_i32 = arith.constant 0 : i32
    %c0_i32_0 = arith.constant 0 : i32
    %c0_i32_1 = arith.constant 0 : i32
    return %c0_i32, %c0_i32_0 : i32, i32
  }
  func.func @transform_3(%arg0: i32) -> (i32, i32) {
    %c0_i32 = arith.constant 0 : i32
    %c0_i32_0 = arith.constant 0 : i32
    %c0_i32_1 = arith.constant 0 : i32
    return %c0_i32, %c0_i32_0 : i32, i32
  }
  func.func @transform_4(%arg0: i32) -> (i32, i32) {
    %c0_i32 = arith.constant 0 : i32
    %c0_i32_0 = arith.constant 0 : i32
    %c0_i32_1 = arith.constant 0 : i32
    return %c0_i32, %c0_i32_0 : i32, i32
  }
  func.func @transform_5(%arg0: i32) -> (i32, i32) {
    %c0_i32 = arith.constant 0 : i32
    %c0_i32_0 = arith.constant 0 : i32
    %c0_i32_1 = arith.constant 0 : i32
    return %c0_i32, %c0_i32_0 : i32, i32
  }
  func.func @transform_6(%arg0: i32) -> (i32, i32) {
    %c0_i32 = arith.constant 0 : i32
    %c0_i32_0 = arith.constant 0 : i32
    %c0_i32_1 = arith.constant 0 : i32
    return %c0_i32, %c0_i32_0 : i32, i32
  }
}

</mosaic_0001>

<bundles_post_ra>
// kernel: two_head_dcnn_forward.1
= control target key start
LH: loop header
LB: loop body
LE: loop exit
PB: predicated region body
PF: predicated region fallthrough
CT: control target
= control target key end

     0   :  { %11 = vsyncpa [#allocation3], 0  ;;  %s2722_s0 = inlined_call_operand.vmem [shape: bf16[8,17], index: 0, kind: input, shape index: {}]   ;;  %s2723_s1 = inlined_call_operand.hbm [shape: bf16[17,33], index: 1, kind: input, shape index: {}]   ;;  %s2724_s2 = inlined_call_operand.hbm [shape: bf16[33,33], index: 2, kind: input, shape index: {}]   ;;  %s2725_s3 = inlined_call_operand.hbm [shape: bf16[33,73], index: 3, kind: input, shape index: {}]   ;;  %s2726_s4 = inlined_call_operand.hbm [shape: bf16[73,401], index: 4, kind: input, shape index: {}]   ;;  %s2727_s5 = inlined_call_operand.hbm [shape: bf16[401,1024], index: 5, kind: input, shape index: {}]   ;;  %s2728_s6 = inlined_call_operand.vmem [shape: f32[8,1024], index: 6, kind: output, shape index: {}]  }
   0x1   :  { %12 = vsyncpa [#allocation5], 0 }
   0x2   :  { %13 = vsyncpa [#allocation8], 0  ;;  %s2565_s21 = smov [#allocation4]   ;;  %s2566_s23 = smov [#allocation7]  }
   0x3   :  { %s33_s22 = sshll.u32 %s2565_s21, 4  ;;  %s57_s24 = sshll.u32 %s2566_s23, 4  ;;  %s34_s22 = int_to_ptr.vmem [resolvable:$true] %s33_s22  ;;  %s58_s24 = int_to_ptr.vmem [resolvable:$true] %s57_s24 }
   0x4   :  { %s2467_s25 = scalar_lea.vmem %s34_s22, 320  ;;  %p2472_p1 = scmp.lt.s32.totalorder %s34_s22, %s34_s22 }
   0x5   :  { %p2468_p0 = scmp.ne.s32.totalorder %s34_s22, %s2467_s25  ;;  %p2473_p2 = scmp.lt.s32.totalorder %s2467_s25, %s2467_s25 }
   0x7   :  { %p2474_p3 = por %p2473_p2, %p2472_p1 }
   0x9   :  { %p2475_p4 = pnand %p2474_p3, %p2468_p0 }
   0xb   :  { %2478 = shalt.err (!%p2475_p4)
}
   0xc   :  { %s2567_s26 = smov 64   ;;  %s2568_s27 = smov 4  }
   0xd   :  { %39 = dma.hbm_to_vmem [thread:$0]  %s2724_s2, 320, %s34_s22, [#allocation5], %s2567_s26, %s2567_s26, %s2568_s27  }
   0xe   :  { %s2487_s30 = scalar_lea.vmem %s58_s24, 2560  ;;  %p2492_p6 = scmp.lt.s32.totalorder %s58_s24, %s58_s24 }
   0xf   :  { %p2488_p5 = scmp.ne.s32.totalorder %s58_s24, %s2487_s30  ;;  %p2493_p7 = scmp.lt.s32.totalorder %s2487_s30, %s2487_s30 }
  0x11   :  { %p2494_p8 = por %p2493_p7, %p2492_p6 }
  0x13   :  { %p2495_p9 = pnand %p2494_p8, %p2488_p5 }
  0x15   :  { %2498 = shalt.err (!%p2495_p9)
}
  0x16   :  { %s2569_s7 = smov 256   ;;  %s2570_s8 = smov 16  }
  0x17   :  { %63 = dma.hbm_to_vmem [thread:$0]  %s2726_s4, 2560, %s58_s24, [#allocation8], %s2569_s7, %s2569_s7, %s2570_s8  }
  0x18   :  { %s2571_s11 = smov [#allocation2]   ;;  %s2572_s13 = smov [#allocation6]  }
  0x19   :  { %s21_s12 = sshll.u32 %s2571_s11, 4  ;;  %s45_s14 = sshll.u32 %s2572_s13, 4  ;;  %s22_s12 = int_to_ptr.vmem [resolvable:$true] %s21_s12  ;;  %s46_s14 = int_to_ptr.vmem [resolvable:$true] %s45_s14 }
  0x1a   :  { %s2507_s2 = scalar_lea.vmem %s22_s12, 192  ;;  %p2512_p11 = scmp.lt.s32.totalorder %s22_s12, %s22_s12 }
  0x1b   :  { %p2508_p10 = scmp.ne.s32.totalorder %s22_s12, %s2507_s2  ;;  %p2513_p12 = scmp.lt.s32.totalorder %s2507_s2, %s2507_s2 }
  0x1d   :  { %p2514_p13 = por %p2513_p12, %p2512_p11 }
  0x1f   :  { %p2515_p0 = pnand %p2514_p13, %p2508_p10 }
  0x21   :  { %2518 = shalt.err (!%p2515_p0)
}
  0x22   :  { %27 = dma.hbm_to_vmem [thread:$0]  %s2723_s1, 192, %s22_s12, [#allocation3], %s2567_s26, %s2567_s26, %s2568_s27  }
  0x23   :  { %s2527_s4 = scalar_lea.vmem %s46_s14, 320  ;;  %p2532_p2 = scmp.lt.s32.totalorder %s46_s14, %s46_s14 }
  0x24   :  { %p2528_p1 = scmp.ne.s32.totalorder %s46_s14, %s2527_s4  ;;  %p2533_p3 = scmp.lt.s32.totalorder %s2527_s4, %s2527_s4 }
  0x26   :  { %p2534_p4 = por %p2533_p3, %p2532_p2 }
  0x28   :  { %p2535_p5 = pnand %p2534_p4, %p2528_p1 }
  0x2a   :  { %2538 = shalt.err (!%p2535_p5)
}
  0x2b   :  { %51 = dma.hbm_to_vmem [thread:$0]  %s2725_s3, 320, %s46_s14, [#allocation5], %s2567_s26, %s2567_s26, %s2568_s27  }
  0x2c   :  { %s2573_s19 = smov [#allocation9]  }
  0x2d   :  { %s69_s20 = sshll.u32 %s2573_s19, 4  ;;  %s70_s20 = int_to_ptr.vmem [resolvable:$true] %s69_s20 }
  0x2e   :  { %s2547_s21 = scalar_lea.vmem %s70_s20, 26112  ;;  %p2552_p7 = scmp.lt.s32.totalorder %s70_s20, %s70_s20 }
  0x2f   :  { %p2548_p6 = scmp.ne.s32.totalorder %s70_s20, %s2547_s21  ;;  %p2553_p8 = scmp.lt.s32.totalorder %s2547_s21, %s2547_s21 }
  0x31   :  { %p2554_p9 = por %p2553_p8, %p2552_p7 }
  0x33   :  { %p2555_p10 = pnand %p2554_p9, %p2548_p6 }
  0x35   :  { %2558 = shalt.err (!%p2555_p10)
}
  0x36   :  { %s2574_s1 = smov 512   ;;  %s2575_s22 = smov 32  }
  0x37   :  { %75 = dma.hbm_to_vmem [thread:$0]  %s2727_s5, 26112, %s70_s20, [#allocation8], %s2574_s1, %s2574_s1, %s2575_s22  }
  0x38   :  { %2559 = dma.done.wait [#allocation3], 192  }
  0x39   :  { %2560 = vsyncadd [#allocation3], 4294967104 }
  0x3a   :  { %2561 = dma.done.wait [#allocation5], 640  }
  0x3b   :  { %2562 = vsyncadd [#allocation5], 4294966656 }
  0x3c   :  { %2563 = dma.done.wait [#allocation8], 28672  }
  0x3d   :  { %2564 = vsyncadd [#allocation8], 4294938624  ;;  %v2576_v0 = vmov 0.0   ;;  %vm2577_vm0 = vmmov 0   ;;  %vm109_vm1 = vcmask 1040384   ;;  %v2578_v1 = vmov 0  }
  0x3e   :  { %2370 = vmatprep.subr.bf16.mxu0 %v2576_v0  ;;  %2374 = vmatprep.mubr.msk.bf16.mxu0 %vm2577_vm0, %v2576_v0  ;;  %v2642_v2 = vsel %vm109_vm1, 65535, %v2578_v1  ;;  %v2413_v3 = vld [vmem:[#allocation2 + $0x8] ss:$0 sps:$4 sm:$0x11]   ;;  %v2414_v5 = vld [vmem:[#allocation2] sm:$0xff]   ;;  %v2416_v8 = vld [vmem:[#allocation4 + $0x8] sm:$0xff]  }
  0x3f   :  { %2378 = vmatprep.subr.bf16.mxu1 %v2576_v0  ;;  %2384 = vmatprep.mubr.msk.bf16.mxu1 %vm2577_vm0, %v2576_v0  ;;  %v113_v4 = vand.u32 %v2413_v3, %v2642_v2  ;;  %v2415_v6 = vld [vmem:[#allocation4 + $0x10] ss:$0 sps:$4 sm:$0x11]   ;;  %v92_v9 = vld [vmem:[%s2722_s0] sm:$0xf]  ;;  %vm105_vm2 = vcmask 138240  }
  0x40   :  { %v182_v7 = vand.u32 %v2415_v6, %v2642_v2  ;;  %v2417_v10 = vld [vmem:[#allocation4] sm:$0xff]   ;;  %vm177_vm3 = vcmask 269312   ;;  %v2420_v20 = vld [vmem:[#allocation6] sm:$0xff]   ;;  %v2423_v22 = vld [vmem:[#allocation7 + $0x84] ss:$16 sps:$4 sm:$0x1f]  }
  0x41   :  { %2371 = vmatpush3.bf16.msra.mxu0 %v113_v4  ;;  %v2418_v11 = vld [vmem:[#allocation6 + $0x10] ss:$0 sps:$4 sm:$0x11]   ;;  %v2419_v13 = vld [vmem:[#allocation6 + $0x8] sm:$0xff]   ;;  %vm414_vm4 = vcmask 1043456   ;;  %vm415_vm5 = vcmask 1044480  }
  0x42   :  { %2372 = vmatprep.subr.bf16.mxu0 %v2576_v0  ;;  %2379 = vmatpush3.bf16.msra.mxu1 %v182_v7  ;;  %v250_v12 = vand.u32 %v2418_v11, %v2642_v2  ;;  %v2421_v21 = vld [vmem:[#allocation7 + $0x80] ss:$16 sps:$4 sm:$0x1f]   ;;  %v2579_v23 = vmov 65535   ;;  %v2429_v30 = vld [vmem:[#allocation7 + $0x64] ss:$16 sps:$4 sm:$0xff]  }
  0x43   :  { %2380 = vmatprep.subr.bf16.mxu1 %v2576_v0  ;;  %v416_v24 = vsel %vm414_vm4, 4294967295, %v2579_v23  ;;  %v2426_v25 = vld [vmem:[#allocation7 + $0x8c] ss:$16 sps:$4 sm:$0x1f]   ;;  %v2427_v31 = vld [vmem:[#allocation7 + $0x60] ss:$16 sps:$4 sm:$0xff]  }
  0x44   :  { %v417_v26 = vsel %vm415_vm5, %v416_v24, 0  ;;  %v2435_v32 = vld [vmem:[#allocation7 + $0x44] ss:$16 sps:$4 sm:$0xff]   ;;  %v2433_v33 = vld [vmem:[#allocation7 + $0x40] ss:$16 sps:$4 sm:$0xff]   ;;  %vm410_vm6 = vcmask 596992  }
  0x45   :  { %2373 = vmatpush3.bf16.msra.mxu0 %v2414_v5  ;;  %v422_v27 = vand.u32 %v2423_v22, %v417_v26  ;;  %v428_v28 = vand.u32 %v2426_v25, %v417_v26  ;;  %v419_v29 = vand.u32 %v2421_v21, %v417_v26  ;;  %v2441_v34 = vld [vmem:[#allocation7 + $0x24] ss:$16 sps:$4 sm:$0xff]   ;;  %v2439_v35 = vld [vmem:[#allocation7 + $0x20] ss:$16 sps:$4 sm:$0xff]   ;;  %v2432_v42 = vld [vmem:[#allocation7 + $0x6c] ss:$16 sps:$4 sm:$0xff]  }
  0x46   :  { %2388 = vmatprep.subr.bf16.mxu0 %v2576_v0  ;;  %2381 = vmatpush3.bf16.msra.mxu1 %v2416_v8  ;;  %v2424_v36 = vld [vmem:[#allocation7 + $0x88] ss:$16 sps:$4 sm:$0x1f]   ;;  %v2438_v46 = vld [vmem:[#allocation7 + $0x4c] ss:$16 sps:$4 sm:$0xff]   ;;  %v572_v54 = vld [vmem:[#allocation9 + $0x1c0] sm:$0xff] }
  0x47   :  { %2382 = vmatprep.subr.bf16.mxu1 %v2576_v0  ;;  %v425_v40 = vand.u32 %v2424_v36, %v417_v26  ;;  %v2430_v45 = vld [vmem:[#allocation7 + $0x68] ss:$16 sps:$4 sm:$0xff]   ;;  %v2444_v48 = vld [vmem:[#allocation7 + $0x2c] ss:$16 sps:$4 sm:$0xff]   ;;  %v2447_v50 = vld [vmem:[#allocation7 + $0x4] ss:$16 sps:$4 sm:$0xff]  }
  0x48   :  { %2375 = vmatmul.mubr.msk.bf16.vlgmr.msra.gmra.mxu0 %vm105_vm2, %v92_v9  ;;  %v2436_v47 = vld [vmem:[#allocation7 + $0x48] ss:$16 sps:$4 sm:$0xff]   ;;  %v2450_v51 = vld [vmem:[#allocation7 + $0xc] ss:$16 sps:$4 sm:$0xff]   ;;  %v2445_v52 = vld [vmem:[#allocation7] ss:$16 sps:$4 sm:$0xff]  }
  0x49   :  { %2394 = vmatprep.mubr.msk.bf16.mxu0 %vm2577_vm0, %v2576_v0  ;;  %2389 = vmatpush3.bf16.msra.mxu0 %v250_v12  ;;  %v2442_v49 = vld [vmem:[#allocation7 + $0x28] ss:$16 sps:$4 sm:$0xff]   ;;  %v576_v55 = vld [vmem:[#allocation9 + $0x1e0] sm:$0xff] }
  0x4a   :  { %2383 = vmatpush3.bf16.msra.mxu1 %v2417_v10  ;;  %2390 = vmatprep.subr.bf16.mxu0 %v2576_v0  ;;  %v2448_v53 = vld [vmem:[#allocation7 + $0x8] ss:$16 sps:$4 sm:$0xff]   ;;  %v2203_v56 = vcombine.low %v572_v54, %v576_v55  ;;  %v2204_v57 = vcombine.high %v572_v54, %v576_v55  ;;  %v700_v58 = vld [vmem:[#allocation9 + $0x5c0] sm:$0xff] }
  0x4b   :  { %436 = vmatprep.subr.bf16.mxu1 %v422_v27  ;;  %v704_v59 = vld [vmem:[#allocation9 + $0x5e0] sm:$0xff] }
  0x4c   :  { %v2331_v60 = vcombine.low %v700_v58, %v704_v59  ;;  %v2332_v61 = vcombine.high %v700_v58, %v704_v59  ;;  %v564_v62 = vld [vmem:[#allocation9 + $0x180] sm:$0xff] }
  0x4d   :  { %2391 = vmatpush3.bf16.msra.mxu0 %v2419_v13  ;;  %v696_v3 = vld [vmem:[#allocation9 + $0x5a0] sm:$0xff] }
  0x4e   :  { %2392 = vmatprep.subr.bf16.mxu0 %v2576_v0  ;;  %v568_v0 = vld [vmem:[#allocation9 + $0x1a0] sm:$0xff] }
  0x4f   :  { %v2196_v7 = vcombine.high %v564_v62, %v568_v0  ;;  %v556_v8 = vld [vmem:[#allocation9 + $0x140] sm:$0xff] }
  0x50   :  { %v560_v11 = vld [vmem:[#allocation9 + $0x160] sm:$0xff] }
  0x51   :  { %2393 = vmatpush3.bf16.msra.mxu0 %v2420_v20  ;;  %v684_v12 = vld [vmem:[#allocation9 + $0x540] sm:$0xff]  ;;  %v2187_v23 = vcombine.low %v556_v8, %v560_v11 }
  0x52   :  { %477 = vmatprep.subr.bf16.mxu0 %v428_v28  ;;  %v688_v13 = vld [vmem:[#allocation9 + $0x560] sm:$0xff] }
  0x53   :  { %v552_v20 = vld [vmem:[#allocation9 + $0x120] sm:$0xff]  ;;  %v2315_v24 = vcombine.low %v684_v12, %v688_v13 }
  0x54   :  { %v676_v21 = vld [vmem:[#allocation9 + $0x500] sm:$0xff] }
  0x55   :  { %v680_v22 = vld [vmem:[#allocation9 + $0x520] sm:$0xff] }
  0x56   :  { %v540_v26 = vld [vmem:[#allocation9 + $0xc0] sm:$0xff]  ;;  %v2308_v27 = vcombine.high %v676_v21, %v680_v22 }
  0x57   :  { %v544_v28 = vld [vmem:[#allocation9 + $0xe0] sm:$0xff] }
  0x58   :  { %v536_v36 = vld [vmem:[#allocation9 + $0xa0] sm:$0xff] }
  0x59   :  { %v648_v54 = vld [vmem:[#allocation9 + $0x420] sm:$0xff] }
  0x5a   :  { %v2656_v55 = vld [vmem:[#allocation9 + $0x640] sm:$0x11] }
 0x108   :  { %v149_v14 = vpop.f32.mrf.mxu0 }
 0x109   :  { %v155_v15 = vmax.f32 %v149_v14, 0.0 }
 0x10a   :  { %v2376_v16 = vpop.f32.mrf.mxu0 }
 0x10b   :  { %v161_v17 = vpack.c.bf16 %v155_v15, %v155_v15  ;;  %v2195_v15 = vcombine.low %v564_v62, %v568_v0  ;;  %v640_v62 = vld [vmem:[#allocation9 + $0x3e0] sm:$0xff] }
 0x10c   :  { %v152_v18 = vpop.f32.mrf.mxu0 }
 0x10d   :  { %2385 = vmatmul.mubr.msk.bf16.vlgmr.msra.gmra.mxu1 %vm177_vm3, %v161_v17  ;;  %v2188_v17 = vcombine.high %v556_v8, %v560_v11  ;;  %v548_v18 = vld [vmem:[#allocation9 + $0x100] sm:$0xff] }
 0x10e   :  { %v2377_v19 = vpop.f32.mrf.mxu0  ;;  %462 = vmatprep.mubr.bf16.mxu1 %v2578_v1  ;;  %437 = vmatpush1.bf16.msra.mxu1 %v419_v29  ;;  %v2180_v25 = vcombine.high %v548_v18, %v552_v20  ;;  %v668_v29 = vld [vmem:[#allocation9 + $0x4c0] sm:$0xff] }
 0x10f   :  { %438 = vmatprep.subr.bf16.mxu1 %v2429_v30  ;;  %v2316_v19 = vcombine.high %v684_v12, %v688_v13  ;;  %v672_v30 = vld [vmem:[#allocation9 + $0x4e0] sm:$0xff] }
 0x110   :  { %v620_v8 = vld [vmem:[#allocation9 + $0x340] sm:$0xff] }
 0x111   :  { %v612_v12 = vld [vmem:[#allocation9 + $0x300] sm:$0xff] }
 0x112   :  { %439 = vmatpush1.bf16.msra.mxu1 %v2427_v31  ;;  %v2179_v31 = vcombine.low %v548_v18, %v552_v20  ;;  %v616_v13 = vld [vmem:[#allocation9 + $0x320] sm:$0xff] }
 0x113   :  { %440 = vmatprep.subr.bf16.mxu1 %v2435_v32  ;;  %v2307_v32 = vcombine.low %v676_v21, %v680_v22  ;;  %v2243_v18 = vcombine.low %v612_v12, %v616_v13  ;;  %v596_v20 = vld [vmem:[#allocation9 + $0x280] sm:$0xff] }
 0x114   :  { %v600_v21 = vld [vmem:[#allocation9 + $0x2a0] sm:$0xff] }
 0x116   :  { %441 = vmatpush1.bf16.msra.mxu1 %v2433_v33  ;;  %v2172_v33 = vcombine.high %v540_v26, %v544_v28 }
 0x117   :  { %442 = vmatprep.subr.bf16.mxu1 %v2441_v34  ;;  %v532_v34 = vld [vmem:[#allocation9 + $0x80] sm:$0xff] }
 0x11a   :  { %443 = vmatpush1.bf16.msra.mxu1 %v2439_v35  ;;  %v2300_v35 = vcombine.high %v668_v29, %v672_v30 }
 0x11b   :  { %444 = vmatprep.subr.bf16.mxu1 %v2447_v50  ;;  %v516_v50 = vld [vmem:[#allocation9] sm:$0xff] }
 0x11e   :  { %445 = vmatpush1.bf16.msra.mxu1 %v2445_v52 }
 0x11f   :  { %1771 = vmatprep.subr.bf16.mxu1 %v2204_v57 }
 0x1cd   :  { %v218_v37 = vpop.f32.mrf.mxu1 }
 0x1ce   :  { %v224_v38 = vmax.f32 %v218_v37, 0.0  ;;  %v660_v37 = vld [vmem:[#allocation9 + $0x480] sm:$0xff] }
 0x1cf   :  { %v2386_v39 = vpop.f32.mrf.mxu1 }
 0x1d0   :  { %v230_v41 = vpack.c.bf16 %v224_v38, %v224_v38  ;;  %v664_v38 = vld [vmem:[#allocation9 + $0x4a0] sm:$0xff]  ;;  %v2171_v39 = vcombine.low %v540_v26, %v544_v28  ;;  %v2227_v26 = vcombine.low %v596_v20, %v600_v21 }
 0x1d1   :  { %v221_v43 = vpop.f32.mrf.mxu1 }
 0x1d2   :  { %2395 = vmatmul.mubr.msk.bf16.vlgmr.msra.gmra.mxu0 %vm177_vm3, %v230_v41  ;;  %v2164_v41 = vcombine.high %v532_v34, %v536_v36  ;;  %v2292_v43 = vcombine.high %v660_v37, %v664_v38 }
 0x1d3   :  { %v2387_v44 = vpop.f32.mrf.mxu1  ;;  %478 = vmatpush1.bf16.msra.mxu0 %v425_v40  ;;  %503 = vmatprep.mubr.bf16.mxu0 %v2578_v1  ;;  %v692_v1 = vld [vmem:[#allocation9 + $0x580] sm:$0xff]  ;;  %v2299_v40 = vcombine.low %v668_v29, %v672_v30  ;;  %v2347_v29 = vcombine.low %v2656_v55, %v2656_v55 }
 0x1d4   :  { %479 = vmatprep.subr.bf16.mxu0 %v2432_v42  ;;  %v2324_v9 = vcombine.high %v692_v1, %v696_v3  ;;  %v2323_v16 = vcombine.low %v692_v1, %v696_v3  ;;  %v524_v42 = vld [vmem:[#allocation9 + $0x40] sm:$0xff] }
 0x1d5   :  { %v528_v44 = vld [vmem:[#allocation9 + $0x60] sm:$0xff]  ;;  %v1748_v30 = vand.u32 %v2347_v29, %v2642_v2 }
 0x1d7   :  { %480 = vmatpush1.bf16.msra.mxu0 %v2430_v45  ;;  %v652_v45 = vld [vmem:[#allocation9 + $0x440] sm:$0xff] }
 0x1d8   :  { %481 = vmatprep.subr.bf16.mxu0 %v2438_v46  ;;  %v656_v46 = vld [vmem:[#allocation9 + $0x460] sm:$0xff] }
 0x1d9   :  { %v2284_v52 = vcombine.high %v652_v45, %v656_v46  ;;  %v2283_v57 = vcombine.low %v652_v45, %v656_v46 }
 0x1db   :  { %482 = vmatpush1.bf16.msra.mxu0 %v2436_v47  ;;  %v2163_v47 = vcombine.low %v532_v34, %v536_v36 }
 0x1dc   :  { %483 = vmatprep.subr.bf16.mxu0 %v2444_v48  ;;  %v2291_v48 = vcombine.low %v660_v37, %v664_v38 }
 0x1df   :  { %484 = vmatpush1.bf16.msra.mxu0 %v2442_v49  ;;  %v2156_v49 = vcombine.high %v524_v42, %v528_v44 }
 0x1e0   :  { %485 = vmatprep.subr.bf16.mxu0 %v2450_v51  ;;  %v520_v51 = vld [vmem:[#allocation9 + $0x20] sm:$0xff] }
 0x1e1   :  { %v2148_v58 = vcombine.high %v516_v50, %v520_v51 }
 0x1e3   :  { %486 = vmatpush1.bf16.msra.mxu0 %v2448_v53  ;;  %v644_v53 = vld [vmem:[#allocation9 + $0x400] sm:$0xff] }
 0x1e4   :  { %1812 = vmatprep.subr.bf16.mxu0 %v2332_v61  ;;  %v2276_v59 = vcombine.high %v644_v53, %v648_v54  ;;  %v636_v61 = vld [vmem:[#allocation9 + $0x3c0] sm:$0xff]  ;;  %v2275_v0 = vcombine.low %v644_v53, %v648_v54 }
 0x1e5   :  { %v2268_v1 = vcombine.high %v636_v61, %v640_v62 }
 0x292   :  { %v286_v63 = vpop.f32.mrf.mxu0 }
 0x293   :  { %v292_v4 = vmax.f32 %v286_v63, 0.0  ;;  %v2147_v63 = vcombine.low %v516_v50, %v520_v51 }
 0x294   :  { %v2396_v5 = vpop.f32.mrf.mxu0 }
 0x295   :  { %v313_v6 = vpack.c.bf16 %v292_v4, %v292_v4  ;;  %v628_v4 = vld [vmem:[#allocation9 + $0x380] sm:$0xff] }
 0x296   :  { %v289_v10 = vpop.f32.mrf.mxu0  ;;  %v632_v5 = vld [vmem:[#allocation9 + $0x3a0] sm:$0xff] }
 0x297   :  { %2145 = vmatmul.mubr.msk.bf16.vlgmr.msra.gmra.mxu1 %vm410_vm6, %v313_v6  ;;  %2146 = vmatmul.mubr.msk.bf16.vlgmr.msra.gmra.mxu0 %vm410_vm6, %v313_v6  ;;  %v2267_v6 = vcombine.low %v636_v61, %v640_v62  ;;  %v2259_v10 = vcombine.low %v628_v4, %v632_v5 }
 0x298   :  { %v2397_v14 = vpop.f32.mrf.mxu0  ;;  %1772 = vmatpush1.bf16.msra.mxu1 %v2203_v56  ;;  %1813 = vmatpush1.bf16.msra.mxu0 %v2331_v60  ;;  %v2155_v56 = vcombine.low %v524_v42, %v528_v44  ;;  %v2348_v60 = vcombine.high %v2656_v55, %v2656_v55  ;;  %v565_v55 = vld [vmem:[#allocation9 + $0x188] sm:$0xff] }
 0x299   :  { %1773 = vmatprep.subr.bf16.mxu1 %v2196_v7  ;;  %1814 = vmatprep.subr.bf16.mxu0 %v2324_v9  ;;  %v2260_v7 = vcombine.high %v628_v4, %v632_v5  ;;  %v624_v9 = vld [vmem:[#allocation9 + $0x360] sm:$0xff]  ;;  %v557_v4 = vld [vmem:[#allocation9 + $0x148] sm:$0xff] }
 0x29a   :  { %v1751_v3 = vand.u32 %v2348_v60, %v2642_v2  ;;  %v2252_v11 = vcombine.high %v620_v8, %v624_v9  ;;  %v2251_v14 = vcombine.low %v620_v8, %v624_v9  ;;  %v697_v60 = vld [vmem:[#allocation9 + $0x5a8] sm:$0xff] }
 0x29b   :  { %v685_v8 = vld [vmem:[#allocation9 + $0x548] sm:$0xff] }
 0x29c   :  { %1774 = vmatpush1.bf16.msra.mxu1 %v2195_v15  ;;  %1815 = vmatpush1.bf16.msra.mxu0 %v2323_v16  ;;  %v2244_v15 = vcombine.high %v612_v12, %v616_v13  ;;  %v604_v16 = vld [vmem:[#allocation9 + $0x2c0] sm:$0xff]  ;;  %v689_v9 = vld [vmem:[#allocation9 + $0x568] sm:$0xff] }
 0x29d   :  { %1775 = vmatprep.subr.bf16.mxu1 %v2188_v17  ;;  %1816 = vmatprep.subr.bf16.mxu0 %v2316_v19  ;;  %v608_v17 = vld [vmem:[#allocation9 + $0x2e0] sm:$0xff]  ;;  %v2318_v13 = vcombine.high %v685_v8, %v689_v9 }
 0x29e   :  { %v2236_v19 = vcombine.high %v604_v16, %v608_v17  ;;  %v2235_v22 = vcombine.low %v604_v16, %v608_v17  ;;  %v677_v16 = vld [vmem:[#allocation9 + $0x508] sm:$0xff] }
 0x29f   :  { %v681_v17 = vld [vmem:[#allocation9 + $0x528] sm:$0xff] }
 0x2a0   :  { %1776 = vmatpush1.bf16.msra.mxu1 %v2187_v23  ;;  %1817 = vmatpush1.bf16.msra.mxu0 %v2315_v24  ;;  %v2228_v23 = vcombine.high %v596_v20, %v600_v21  ;;  %v588_v24 = vld [vmem:[#allocation9 + $0x240] sm:$0xff]  ;;  %v2310_v21 = vcombine.high %v677_v16, %v681_v17 }
 0x2a1   :  { %1777 = vmatprep.subr.bf16.mxu1 %v2180_v25  ;;  %1818 = vmatprep.subr.bf16.mxu0 %v2308_v27  ;;  %v592_v25 = vld [vmem:[#allocation9 + $0x260] sm:$0xff] }
 0x2a2   :  { %v2220_v27 = vcombine.high %v588_v24, %v592_v25  ;;  %v2219_v28 = vcombine.low %v588_v24, %v592_v25  ;;  %v669_v24 = vld [vmem:[#allocation9 + $0x4c8] sm:$0xff] }
 0x2a3   :  { %v673_v25 = vld [vmem:[#allocation9 + $0x4e8] sm:$0xff] }
 0x2a4   :  { %1778 = vmatpush1.bf16.msra.mxu1 %v2179_v31  ;;  %1819 = vmatpush1.bf16.msra.mxu0 %v2307_v32  ;;  %v580_v31 = vld [vmem:[#allocation9 + $0x200] sm:$0xff]  ;;  %v2302_v29 = vcombine.high %v669_v24, %v673_v25 }
 0x2a5   :  { %1779 = vmatprep.subr.bf16.mxu1 %v2172_v33  ;;  %1820 = vmatprep.subr.bf16.mxu0 %v2300_v35  ;;  %v584_v32 = vld [vmem:[#allocation9 + $0x220] sm:$0xff] }
 0x2a6   :  { %v708_v33 = vld [vmem:[#allocation9 + $0x600] sm:$0xff]  ;;  %v2212_v34 = vcombine.high %v580_v31, %v584_v32  ;;  %v2211_v36 = vcombine.low %v580_v31, %v584_v32  ;;  %v537_v31 = vld [vmem:[#allocation9 + $0xa8] sm:$0xff] }
 0x2a7   :  { %v712_v35 = vld [vmem:[#allocation9 + $0x620] sm:$0xff]  ;;  %v661_v32 = vld [vmem:[#allocation9 + $0x488] sm:$0xff] }
 0x2a8   :  { %1780 = vmatpush1.bf16.msra.mxu1 %v2171_v39  ;;  %1821 = vmatpush1.bf16.msra.mxu0 %v2299_v40  ;;  %v2339_v37 = vcombine.low %v708_v33, %v712_v35  ;;  %v2340_v38 = vcombine.high %v708_v33, %v712_v35  ;;  %v573_v39 = vld [vmem:[#allocation9 + $0x1c8] sm:$0xff]  ;;  %v2301_v35 = vcombine.low %v669_v24, %v673_v25 }
 0x2a9   :  { %1781 = vmatprep.subr.bf16.mxu1 %v2164_v41  ;;  %1822 = vmatprep.subr.bf16.mxu0 %v2292_v43  ;;  %v577_v40 = vld [vmem:[#allocation9 + $0x1e8] sm:$0xff] }
 0x2aa   :  { %v701_v41 = vld [vmem:[#allocation9 + $0x5c8] sm:$0xff]  ;;  %v2206_v42 = vcombine.high %v573_v39, %v577_v40  ;;  %v2205_v44 = vcombine.low %v573_v39, %v577_v40 }
 0x2ab   :  { %v705_v43 = vld [vmem:[#allocation9 + $0x5e8] sm:$0xff] }
 0x2ac   :  { %1782 = vmatpush1.bf16.msra.mxu1 %v2163_v47  ;;  %1823 = vmatpush1.bf16.msra.mxu0 %v2291_v48  ;;  %v2333_v45 = vcombine.low %v701_v41, %v705_v43  ;;  %v2334_v46 = vcombine.high %v701_v41, %v705_v43  ;;  %v665_v33 = vld [vmem:[#allocation9 + $0x4a8] sm:$0xff] }
 0x2ad   :  { %1783 = vmatprep.subr.bf16.mxu1 %v2156_v49  ;;  %1824 = vmatprep.subr.bf16.mxu0 %v2284_v52  ;;  %v529_v39 = vld [vmem:[#allocation9 + $0x68] sm:$0xff]  ;;  %v2293_v43 = vcombine.low %v661_v32, %v665_v33 }
 0x2ae   :  { %v653_v40 = vld [vmem:[#allocation9 + $0x448] sm:$0xff] }
 0x2af   :  { %v657_v41 = vld [vmem:[#allocation9 + $0x468] sm:$0xff] }
 0x2b0   :  { %1784 = vmatpush1.bf16.msra.mxu1 %v2155_v56  ;;  %1825 = vmatpush1.bf16.msra.mxu0 %v2283_v57 }
 0x2b1   :  { %1785 = vmatprep.subr.bf16.mxu1 %v2148_v58  ;;  %1826 = vmatprep.subr.bf16.mxu0 %v2276_v59  ;;  %v569_v58 = vld [vmem:[#allocation9 + $0x1a8] sm:$0xff] }
 0x2b2   :  { %v693_v59 = vld [vmem:[#allocation9 + $0x588] sm:$0xff]  ;;  %v2198_v5 = vcombine.high %v565_v55, %v569_v58 }
 0x2b4   :  { %1786 = vmatpush1.bf16.msra.mxu1 %v2147_v63  ;;  %1827 = vmatpush1.bf16.msra.mxu0 %v2275_v0 }
 0x2b5   :  { %1787 = vmatprep.subr.bf16.mxu1 %v2268_v1  ;;  %1840 = vmatprep.subr.bf16.mxu0 %v1751_v3 }
 0x2b8   :  { %1788 = vmatpush2.bf16.msra.mxu1 %v2267_v6  ;;  %1841 = vmatpush2.bf16.msra.mxu0 %v1748_v30  ;;  %v2326_v6 = vcombine.high %v693_v59, %v697_v60  ;;  %v533_v30 = vld [vmem:[#allocation9 + $0x88] sm:$0xff] }
 0x2b9   :  { %1789 = vmatprep.subr.bf16.mxu1 %v2260_v7  ;;  %1842 = vmatprep.subr.bf16.mxu0 %v2340_v38  ;;  %v561_v7 = vld [vmem:[#allocation9 + $0x168] sm:$0xff] }
 0x2ba   :  { %v2190_v12 = vcombine.high %v557_v4, %v561_v7  ;;  %v525_v38 = vld [vmem:[#allocation9 + $0x48] sm:$0xff] }
 0x2bc   :  { %1790 = vmatpush2.bf16.msra.mxu1 %v2259_v10  ;;  %1843 = vmatpush2.bf16.msra.mxu0 %v2339_v37  ;;  %v2197_v10 = vcombine.low %v565_v55, %v569_v58  ;;  %v2294_v37 = vcombine.high %v661_v32, %v665_v33 }
 0x2bd   :  { %1791 = vmatprep.subr.bf16.mxu1 %v2252_v11  ;;  %1853 = vmatprep.subr.bf16.mxu0 %v2206_v42  ;;  %v2325_v11 = vcombine.low %v693_v59, %v697_v60  ;;  %v2165_v42 = vcombine.low %v533_v30, %v537_v31 }
 0x2c0   :  { %1792 = vmatpush2.bf16.msra.mxu1 %v2251_v14  ;;  %v549_v14 = vld [vmem:[#allocation9 + $0x108] sm:$0xff] }
 0x2c1   :  { %1793 = vmatprep.subr.bf16.mxu1 %v2244_v15  ;;  %v553_v15 = vld [vmem:[#allocation9 + $0x128] sm:$0xff] }
 0x2c2   :  { %v2182_v20 = vcombine.high %v549_v14, %v553_v15 }
 0x2c4   :  { %1794 = vmatpush2.bf16.msra.mxu1 %v2243_v18  ;;  %v2189_v18 = vcombine.low %v557_v4, %v561_v7  ;;  %v629_v4 = vld [vmem:[#allocation9 + $0x388] sm:$0xff] }
 0x2c5   :  { %1795 = vmatprep.subr.bf16.mxu1 %v2236_v19  ;;  %v2317_v19 = vcombine.low %v685_v8, %v689_v9  ;;  %v713_v7 = vld [vmem:[#allocation9 + $0x628] sm:$0xff] }
 0x2c8   :  { %1796 = vmatpush2.bf16.msra.mxu1 %v2235_v22  ;;  %v541_v22 = vld [vmem:[#allocation9 + $0xc8] sm:$0xff] }
 0x2c9   :  { %1797 = vmatprep.subr.bf16.mxu1 %v2228_v23  ;;  %v545_v23 = vld [vmem:[#allocation9 + $0xe8] sm:$0xff] }
 0x2cc   :  { %1798 = vmatpush2.bf16.msra.mxu1 %v2227_v26  ;;  %v2181_v26 = vcombine.low %v549_v14, %v553_v15  ;;  %v574_v14 = vld [vmem:[#allocation9 + $0x1d0] sm:$0xff] }
 0x2cd   :  { %1799 = vmatprep.subr.bf16.mxu1 %v2220_v27  ;;  %v2309_v27 = vcombine.low %v677_v16, %v681_v17  ;;  %v578_v15 = vld [vmem:[#allocation9 + $0x1f0] sm:$0xff] }
 0x2ce   :  { %v2207_v25 = vcombine.low %v574_v14, %v578_v15 }
 0x2d0   :  { %1800 = vmatpush2.bf16.msra.mxu1 %v2219_v28  ;;  %v2174_v28 = vcombine.high %v541_v22, %v545_v23 }
 0x2d1   :  { %1801 = vmatprep.subr.bf16.mxu1 %v2212_v34  ;;  %v2173_v34 = vcombine.low %v541_v22, %v545_v23  ;;  %v566_v22 = vld [vmem:[#allocation9 + $0x190] sm:$0xff] }
 0x2d2   :  { %v570_v23 = vld [vmem:[#allocation9 + $0x1b0] sm:$0xff] }
 0x2d3   :  { %v2199_v33 = vcombine.low %v566_v22, %v570_v23 }
 0x2d4   :  { %1802 = vmatpush2.bf16.msra.mxu1 %v2211_v36  ;;  %v2166_v36 = vcombine.high %v533_v30, %v537_v31  ;;  %v558_v30 = vld [vmem:[#allocation9 + $0x150] sm:$0xff] }
 0x2d5   :  { %1894 = vmatprep.subr.bf16.mxu1 %v2334_v46  ;;  %v517_v46 = vld [vmem:[#allocation9 + $0x8] sm:$0xff]  ;;  %v562_v31 = vld [vmem:[#allocation9 + $0x170] sm:$0xff] }
 0x357   :  { %v464_v47 = vpop.f32.mrf.mxu1  ;;  %v505_v48 = vpop.f32.mrf.mxu0 }
 0x358   :  { %v512_v49 = vmax.f32 %v464_v47, 0.0  ;;  %v514_v50 = vmax.f32 %v505_v48, 0.0  ;;  %v521_v47 = vld [vmem:[#allocation9 + $0x28] sm:$0xff] }
 0x359   :  { %v466_v51 = vpop.f32.mrf.mxu1  ;;  %v507_v52 = vpop.f32.mrf.mxu0  ;;  %v645_v48 = vld [vmem:[#allocation9 + $0x408] sm:$0xff]  ;;  %v2149_v58 = vcombine.low %v517_v46, %v521_v47 }
 0x35a   :  { %v513_v53 = vmax.f32 %v466_v51, 0.0  ;;  %v515_v54 = vmax.f32 %v507_v52, 0.0  ;;  %v2668_v63 = vpack.c.bf16 %v512_v49, %v512_v49  ;;  %v2670_v0 = vpack.c.bf16 %v514_v50, %v514_v50  ;;  %v649_v49 = vld [vmem:[#allocation9 + $0x428] sm:$0xff] }
 0x35b   :  { %v468_v56 = vpop.f32.mrf.mxu1  ;;  %v509_v57 = vpop.f32.mrf.mxu0  ;;  %v717_v50 = vld [vmem:[#allocation9 + $0x648] sm:$0x11]  ;;  %v2157_v51 = vcombine.low %v525_v38, %v529_v39  ;;  %v2285_v52 = vcombine.low %v653_v40, %v657_v41  ;;  %v2277_v59 = vcombine.low %v645_v48, %v649_v49 }
 0x35c   :  { %v2664_v61 = vpack.c.bf16 %v513_v53, %v513_v53  ;;  %v2666_v62 = vpack.c.bf16 %v515_v54, %v515_v54  ;;  %v2150_v53 = vcombine.high %v517_v46, %v521_v47  ;;  %v2278_v54 = vcombine.high %v645_v48, %v649_v49  ;;  %v637_v56 = vld [vmem:[#allocation9 + $0x3c8] sm:$0xff]  ;;  %v542_v46 = vld [vmem:[#allocation9 + $0xd0] sm:$0xff] }
 0x35d   :  { %v469_v1 = vpop.f32.mrf.mxu1  ;;  %v510_v3 = vpop.f32.mrf.mxu0  ;;  %v2350_v55 = vcombine.high %v717_v50, %v717_v50  ;;  %v641_v57 = vld [vmem:[#allocation9 + $0x3e8] sm:$0xff]  ;;  %v2349_v60 = vcombine.low %v717_v50, %v717_v50  ;;  %v546_v47 = vld [vmem:[#allocation9 + $0xf0] sm:$0xff] }
 0x35e   :  { %1803 = vmatprep.mubr.bf16.mxu1 %v2664_v61  ;;  %2355 = vmatprep.mubr.msk.bf16.mxu0 %vm105_vm2, %v2666_v62  ;;  %v2270_v1 = vcombine.high %v637_v56, %v641_v57  ;;  %v2269_v8 = vcombine.low %v637_v56, %v641_v57  ;;  %v2175_v57 = vcombine.low %v542_v46, %v546_v47 }
 0x35f   :  { %1804 = vmatmul.mubr.bf16.vlgmr.msra.gmra.mxu1 %v2668_v63  ;;  %1845 = vmatmul.mubr.bf16.vlgmr.msra.gmra.mxu0 %v2670_v0  ;;  %v1757_v3 = vand.u32 %v2350_v55, %v2642_v2  ;;  %v1754_v9 = vand.u32 %v2349_v60, %v2642_v2  ;;  %v538_v55 = vld [vmem:[#allocation9 + $0xb0] sm:$0xff] }
 0x360   :  { %1854 = vmatpush1.bf16.msra.mxu0 %v2205_v44  ;;  %1895 = vmatpush1.bf16.msra.mxu1 %v2333_v45  ;;  %v2158_v44 = vcombine.high %v525_v38, %v529_v39  ;;  %v2286_v45 = vcombine.high %v653_v40, %v657_v41  ;;  %v550_v38 = vld [vmem:[#allocation9 + $0x110] sm:$0xff]  ;;  %v2191_v41 = vcombine.low %v558_v30, %v562_v31 }
 0x361   :  { %1885 = vmatprep.mubr.bf16.mxu0 %v2664_v61  ;;  %2356 = vmatprep.mubr.msk.bf16.mxu1 %vm105_vm2, %v2666_v62  ;;  %v554_v39 = vld [vmem:[#allocation9 + $0x130] sm:$0xff] }
 0x362   :  { %1855 = vmatprep.subr.bf16.mxu0 %v2198_v5  ;;  %1896 = vmatprep.subr.bf16.mxu1 %v2326_v6  ;;  %v633_v5 = vld [vmem:[#allocation9 + $0x3a8] sm:$0xff]  ;;  %v2183_v49 = vcombine.low %v550_v38, %v554_v39  ;;  %v526_v60 = vld [vmem:[#allocation9 + $0x50] sm:$0xff] }
 0x363   :  { %v709_v6 = vld [vmem:[#allocation9 + $0x608] sm:$0xff]  ;;  %v2261_v16 = vcombine.low %v629_v4, %v633_v5 }
 0x364   :  { %1856 = vmatpush1.bf16.msra.mxu0 %v2197_v10  ;;  %1897 = vmatpush1.bf16.msra.mxu1 %v2325_v11  ;;  %v2262_v10 = vcombine.high %v629_v4, %v633_v5  ;;  %v2342_v11 = vcombine.high %v709_v6, %v713_v7  ;;  %v2341_v17 = vcombine.low %v709_v6, %v713_v7  ;;  %v706_v4 = vld [vmem:[#allocation9 + $0x5f0] sm:$0xff] }
 0x365   :  { %1857 = vmatprep.subr.bf16.mxu0 %v2190_v12  ;;  %1898 = vmatprep.subr.bf16.mxu1 %v2318_v13  ;;  %v621_v12 = vld [vmem:[#allocation9 + $0x348] sm:$0xff] }
 0x366   :  { %v625_v13 = vld [vmem:[#allocation9 + $0x368] sm:$0xff] }
 0x367   :  { %v2253_v24 = vcombine.low %v621_v12, %v625_v13 }
 0x368   :  { %1858 = vmatpush1.bf16.msra.mxu0 %v2189_v18  ;;  %1899 = vmatpush1.bf16.msra.mxu1 %v2317_v19  ;;  %v2254_v18 = vcombine.high %v621_v12, %v625_v13  ;;  %v2208_v19 = vcombine.high %v574_v14, %v578_v15  ;;  %v698_v12 = vld [vmem:[#allocation9 + $0x5b0] sm:$0xff] }
 0x369   :  { %1859 = vmatprep.subr.bf16.mxu0 %v2182_v20  ;;  %1900 = vmatprep.subr.bf16.mxu1 %v2310_v21  ;;  %v613_v20 = vld [vmem:[#allocation9 + $0x308] sm:$0xff] }
 0x36a   :  { %v617_v21 = vld [vmem:[#allocation9 + $0x328] sm:$0xff] }
 0x36b   :  { %v2245_v32 = vcombine.low %v613_v20, %v617_v21 }
 0x36c   :  { %1860 = vmatpush1.bf16.msra.mxu0 %v2181_v26  ;;  %1901 = vmatpush1.bf16.msra.mxu1 %v2309_v27  ;;  %v2246_v26 = vcombine.high %v613_v20, %v617_v21  ;;  %v605_v27 = vld [vmem:[#allocation9 + $0x2c8] sm:$0xff]  ;;  %v690_v20 = vld [vmem:[#allocation9 + $0x570] sm:$0xff] }
 0x36d   :  { %1861 = vmatprep.subr.bf16.mxu0 %v2174_v28  ;;  %1902 = vmatprep.subr.bf16.mxu1 %v2302_v29  ;;  %v2200_v28 = vcombine.high %v566_v22, %v570_v23  ;;  %v609_v29 = vld [vmem:[#allocation9 + $0x2e8] sm:$0xff] }
 0x36e   :  { %v2237_v40 = vcombine.low %v605_v27, %v609_v29 }
 0x370   :  { %1862 = vmatpush1.bf16.msra.mxu0 %v2173_v34  ;;  %1903 = vmatpush1.bf16.msra.mxu1 %v2301_v35  ;;  %v2238_v34 = vcombine.high %v605_v27, %v609_v29  ;;  %v2192_v35 = vcombine.high %v558_v30, %v562_v31  ;;  %v678_v27 = vld [vmem:[#allocation9 + $0x510] sm:$0xff] }
 0x371   :  { %1863 = vmatprep.subr.bf16.mxu0 %v2166_v36  ;;  %1904 = vmatprep.subr.bf16.mxu1 %v2294_v37  ;;  %v597_v36 = vld [vmem:[#allocation9 + $0x288] sm:$0xff] }
 0x372   :  { %v601_v37 = vld [vmem:[#allocation9 + $0x2a8] sm:$0xff] }
 0x373   :  { %v2229_v48 = vcombine.low %v597_v36, %v601_v37 }
 0x374   :  { %1864 = vmatpush1.bf16.msra.mxu0 %v2165_v42  ;;  %1905 = vmatpush1.bf16.msra.mxu1 %v2293_v43  ;;  %v2230_v42 = vcombine.high %v597_v36, %v601_v37  ;;  %v2184_v43 = vcombine.high %v550_v38, %v554_v39  ;;  %v674_v36 = vld [vmem:[#allocation9 + $0x4f0] sm:$0xff] }
 0x375   :  { %1865 = vmatprep.subr.bf16.mxu0 %v2158_v44  ;;  %1906 = vmatprep.subr.bf16.mxu1 %v2286_v45  ;;  %v589_v44 = vld [vmem:[#allocation9 + $0x248] sm:$0xff] }
 0x376   :  { %v593_v45 = vld [vmem:[#allocation9 + $0x268] sm:$0xff] }
 0x377   :  { %v2222_v50 = vcombine.high %v589_v44, %v593_v45  ;;  %v2221_v56 = vcombine.low %v589_v44, %v593_v45  ;;  %v666_v44 = vld [vmem:[#allocation9 + $0x4b0] sm:$0xff] }
 0x378   :  { %1866 = vmatpush1.bf16.msra.mxu0 %v2157_v51  ;;  %1907 = vmatpush1.bf16.msra.mxu1 %v2285_v52  ;;  %v2176_v51 = vcombine.high %v542_v46, %v546_v47  ;;  %v581_v52 = vld [vmem:[#allocation9 + $0x208] sm:$0xff] }
 0x379   :  { %1867 = vmatprep.subr.bf16.mxu0 %v2150_v53  ;;  %1908 = vmatprep.subr.bf16.mxu1 %v2278_v54  ;;  %v585_v53 = vld [vmem:[#allocation9 + $0x228] sm:$0xff]  ;;  %v534_v54 = vld [vmem:[#allocation9 + $0x90] sm:$0xff] }
 0x37a   :  { %v2213_v5 = vcombine.low %v581_v52, %v585_v53  ;;  %v2167_v6 = vcombine.low %v534_v54, %v538_v55 }
 0x37c   :  { %1868 = vmatpush1.bf16.msra.mxu0 %v2149_v58  ;;  %1909 = vmatpush1.bf16.msra.mxu1 %v2277_v59  ;;  %v2214_v58 = vcombine.high %v581_v52, %v585_v53  ;;  %v2168_v59 = vcombine.high %v534_v54, %v538_v55  ;;  %v658_v52 = vld [vmem:[#allocation9 + $0x470] sm:$0xff] }
 0x37d   :  { %1869 = vmatprep.subr.bf16.mxu0 %v2270_v1  ;;  %1922 = vmatprep.subr.bf16.mxu1 %v1757_v3  ;;  %v530_v1 = vld [vmem:[#allocation9 + $0x70] sm:$0xff] }
 0x37e   :  { %v702_v3 = vld [vmem:[#allocation9 + $0x5d0] sm:$0xff]  ;;  %v2160_v7 = vcombine.high %v526_v60, %v530_v1  ;;  %v2159_v13 = vcombine.low %v526_v60, %v530_v1 }
 0x37f   :  { %v2335_v14 = vcombine.low %v702_v3, %v706_v4  ;;  %v650_v60 = vld [vmem:[#allocation9 + $0x430] sm:$0xff] }
 0x380   :  { %1870 = vmatpush2.bf16.msra.mxu0 %v2269_v8  ;;  %1923 = vmatpush2.bf16.msra.mxu1 %v1754_v9  ;;  %v2336_v8 = vcombine.high %v702_v3, %v706_v4  ;;  %v518_v9 = vld [vmem:[#allocation9 + $0x10] sm:$0xff] }
 0x381   :  { %1871 = vmatprep.subr.bf16.mxu0 %v2262_v10  ;;  %1924 = vmatprep.subr.bf16.mxu1 %v2342_v11  ;;  %v522_v10 = vld [vmem:[#allocation9 + $0x30] sm:$0xff] }
 0x382   :  { %v694_v11 = vld [vmem:[#allocation9 + $0x590] sm:$0xff]  ;;  %v2152_v15 = vcombine.high %v518_v9, %v522_v10  ;;  %v2151_v21 = vcombine.low %v518_v9, %v522_v10 }
 0x383   :  { %v2327_v22 = vcombine.low %v694_v11, %v698_v12  ;;  %v718_v1 = vld [vmem:[#allocation9 + $0x650] sm:$0x11] }
 0x384   :  { %1872 = vmatpush2.bf16.msra.mxu0 %v2261_v16  ;;  %1925 = vmatpush2.bf16.msra.mxu1 %v2341_v17  ;;  %v638_v16 = vld [vmem:[#allocation9 + $0x3d0] sm:$0xff]  ;;  %v2328_v17 = vcombine.high %v694_v11, %v698_v12  ;;  %v2351_v12 = vcombine.low %v718_v1, %v718_v1 }
 0x385   :  { %1873 = vmatprep.subr.bf16.mxu0 %v2254_v18  ;;  %1935 = vmatprep.subr.bf16.mxu1 %v2208_v19  ;;  %v642_v18 = vld [vmem:[#allocation9 + $0x3f0] sm:$0xff] }
 0x386   :  { %v686_v19 = vld [vmem:[#allocation9 + $0x550] sm:$0xff]  ;;  %v2272_v23 = vcombine.high %v638_v16, %v642_v18  ;;  %v2271_v29 = vcombine.low %v638_v16, %v642_v18 }
 0x387   :  { %1927 = vmatmul.mubr.bf16.vlgmr.msra.gmra.mxu1 %v2670_v0  ;;  %v2319_v30 = vcombine.low %v686_v19, %v690_v20  ;;  %v594_v9 = vld [vmem:[#allocation9 + $0x270] sm:$0xff] }
 0x388   :  { %1874 = vmatpush2.bf16.msra.mxu0 %v2253_v24  ;;  %1936 = vmatpush1.bf16.msra.mxu1 %v2207_v25  ;;  %v2320_v24 = vcombine.high %v686_v19, %v690_v20  ;;  %v630_v25 = vld [vmem:[#allocation9 + $0x390] sm:$0xff]  ;;  %v1760_v20 = vand.u32 %v2351_v12, %v2642_v2  ;;  %v655_v12 = vld [vmem:[#allocation9 + $0x458] sm:$0xff] }
 0x389   :  { %1967 = vmatprep.mubr.bf16.mxu1 %v2664_v61  ;;  %1875 = vmatprep.subr.bf16.mxu0 %v2246_v26  ;;  %v634_v26 = vld [vmem:[#allocation9 + $0x3b0] sm:$0xff] }
 0x38a   :  { %1937 = vmatprep.subr.bf16.mxu1 %v2200_v28  ;;  %v682_v28 = vld [vmem:[#allocation9 + $0x530] sm:$0xff]  ;;  %v2264_v31 = vcombine.high %v630_v25, %v634_v26  ;;  %v2263_v37 = vcombine.low %v630_v25, %v634_v26  ;;  %v703_v25 = vld [vmem:[#allocation9 + $0x5d8] sm:$0xff] }
 0x38b   :  { %v2311_v38 = vcombine.low %v678_v27, %v682_v28  ;;  %v586_v16 = vld [vmem:[#allocation9 + $0x230] sm:$0xff]  ;;  %v707_v26 = vld [vmem:[#allocation9 + $0x5f8] sm:$0xff] }
 0x38c   :  { %1876 = vmatpush2.bf16.msra.mxu0 %v2245_v32  ;;  %1938 = vmatpush1.bf16.msra.mxu1 %v2199_v33  ;;  %v2312_v32 = vcombine.high %v678_v27, %v682_v28  ;;  %v622_v33 = vld [vmem:[#allocation9 + $0x350] sm:$0xff] }
 0x38d   :  { %1877 = vmatprep.subr.bf16.mxu0 %v2238_v34  ;;  %1939 = vmatprep.subr.bf16.mxu1 %v2192_v35  ;;  %v626_v34 = vld [vmem:[#allocation9 + $0x370] sm:$0xff] }
 0x38e   :  { %v670_v35 = vld [vmem:[#allocation9 + $0x4d0] sm:$0xff]  ;;  %v2256_v39 = vcombine.high %v622_v33, %v626_v34  ;;  %v2255_v45 = vcombine.low %v622_v33, %v626_v34  ;;  %v695_v33 = vld [vmem:[#allocation9 + $0x598] sm:$0xff] }
 0x38f   :  { %v2303_v46 = vcombine.low %v670_v35, %v674_v36  ;;  %v714_v18 = vld [vmem:[#allocation9 + $0x630] sm:$0xff]  ;;  %v699_v34 = vld [vmem:[#allocation9 + $0x5b8] sm:$0xff] }
 0x390   :  { %1878 = vmatpush2.bf16.msra.mxu0 %v2237_v40  ;;  %1940 = vmatpush1.bf16.msra.mxu1 %v2191_v41  ;;  %v2304_v40 = vcombine.high %v670_v35, %v674_v36  ;;  %v614_v41 = vld [vmem:[#allocation9 + $0x310] sm:$0xff]  ;;  %v2337_v36 = vcombine.low %v703_v25, %v707_v26 }
 0x391   :  { %1879 = vmatprep.subr.bf16.mxu0 %v2230_v42  ;;  %1941 = vmatprep.subr.bf16.mxu1 %v2184_v43  ;;  %v618_v42 = vld [vmem:[#allocation9 + $0x330] sm:$0xff] }
 0x392   :  { %v662_v43 = vld [vmem:[#allocation9 + $0x490] sm:$0xff]  ;;  %v2248_v47 = vcombine.high %v614_v41, %v618_v42  ;;  %v2247_v53 = vcombine.low %v614_v41, %v618_v42  ;;  %v687_v41 = vld [vmem:[#allocation9 + $0x558] sm:$0xff] }
 0x393   :  { %v2295_v54 = vcombine.low %v662_v43, %v666_v44  ;;  %v691_v42 = vld [vmem:[#allocation9 + $0x578] sm:$0xff] }
 0x394   :  { %1880 = vmatpush2.bf16.msra.mxu0 %v2229_v48  ;;  %1942 = vmatpush1.bf16.msra.mxu1 %v2183_v49  ;;  %v2296_v48 = vcombine.high %v662_v43, %v666_v44  ;;  %v606_v49 = vld [vmem:[#allocation9 + $0x2d0] sm:$0xff]  ;;  %v2329_v44 = vcombine.low %v695_v33, %v699_v34 }
 0x395   :  { %1881 = vmatprep.subr.bf16.mxu0 %v2222_v50  ;;  %1943 = vmatprep.subr.bf16.mxu1 %v2176_v51  ;;  %v610_v50 = vld [vmem:[#allocation9 + $0x2f0] sm:$0xff] }
 0x396   :  { %v654_v51 = vld [vmem:[#allocation9 + $0x450] sm:$0xff]  ;;  %v2240_v55 = vcombine.high %v606_v49, %v610_v50  ;;  %v2239_v3 = vcombine.low %v606_v49, %v610_v50  ;;  %v679_v49 = vld [vmem:[#allocation9 + $0x518] sm:$0xff] }
 0x397   :  { %v2287_v4 = vcombine.low %v654_v51, %v658_v52  ;;  %v683_v50 = vld [vmem:[#allocation9 + $0x538] sm:$0xff] }
 0x398   :  { %1882 = vmatpush2.bf16.msra.mxu0 %v2221_v56  ;;  %1944 = vmatpush1.bf16.msra.mxu1 %v2175_v57  ;;  %v2288_v56 = vcombine.high %v654_v51, %v658_v52  ;;  %v598_v57 = vld [vmem:[#allocation9 + $0x290] sm:$0xff]  ;;  %v2321_v52 = vcombine.low %v687_v41, %v691_v42 }
 0x399   :  { %1883 = vmatprep.subr.bf16.mxu0 %v2214_v58  ;;  %1945 = vmatprep.subr.bf16.mxu1 %v2168_v59  ;;  %v602_v58 = vld [vmem:[#allocation9 + $0x2b0] sm:$0xff] }
 0x39a   :  { %v646_v59 = vld [vmem:[#allocation9 + $0x410] sm:$0xff]  ;;  %v2231_v10 = vcombine.low %v598_v57, %v602_v58 }
 0x39b   :  { %v2279_v11 = vcombine.low %v646_v59, %v650_v60 }
 0x39c   :  { %1884 = vmatpush2.bf16.msra.mxu0 %v2213_v5  ;;  %1946 = vmatpush1.bf16.msra.mxu1 %v2167_v6  ;;  %v2232_v5 = vcombine.high %v598_v57, %v602_v58  ;;  %v2280_v6 = vcombine.high %v646_v59, %v650_v60  ;;  %v2313_v58 = vcombine.low %v679_v49, %v683_v50 }
 0x39d   :  { %1947 = vmatprep.subr.bf16.mxu1 %v2160_v7  ;;  %1976 = vmatprep.subr.bf16.mxu0 %v2336_v8  ;;  %v2352_v7 = vcombine.high %v718_v1, %v718_v1  ;;  %v590_v8 = vld [vmem:[#allocation9 + $0x250] sm:$0xff]  ;;  %v535_v1 = vld [vmem:[#allocation9 + $0x98] sm:$0xff] }
 0x39e   :  { %v2223_v19 = vcombine.low %v590_v8, %v594_v9 }
 0x39f   :  { %1886 = vmatmul.mubr.bf16.vlgmr.msra.gmra.mxu0 %v2668_v63 }
 0x3a0   :  { %1948 = vmatpush1.bf16.msra.mxu1 %v2159_v13  ;;  %1977 = vmatpush1.bf16.msra.mxu0 %v2335_v14  ;;  %v2224_v13 = vcombine.high %v590_v8, %v594_v9  ;;  %v1763_v14 = vand.u32 %v2352_v7, %v2642_v2 }
 0x3a1   :  { %2357 = vmatprep.mubr.msk.bf16.mxu0 %vm105_vm2, %v2666_v62  ;;  %1949 = vmatprep.subr.bf16.mxu1 %v2152_v15  ;;  %v582_v15 = vld [vmem:[#allocation9 + $0x210] sm:$0xff] }
 0x3a2   :  { %1978 = vmatprep.subr.bf16.mxu0 %v2328_v17  ;;  %v710_v17 = vld [vmem:[#allocation9 + $0x610] sm:$0xff]  ;;  %v2215_v27 = vcombine.low %v582_v15, %v586_v16 }
 0x3a3   :  { %v2343_v28 = vcombine.low %v710_v17, %v714_v18 }
 0x3a4   :  { %1950 = vmatpush1.bf16.msra.mxu1 %v2151_v21  ;;  %1979 = vmatpush1.bf16.msra.mxu0 %v2327_v22  ;;  %v2216_v21 = vcombine.high %v582_v15, %v586_v16  ;;  %v2344_v22 = vcombine.high %v710_v17, %v714_v18  ;;  %v519_v18 = vld [vmem:[#allocation9 + $0x18] sm:$0xff] }
 0x3a5   :  { %1951 = vmatprep.subr.bf16.mxu1 %v2272_v23  ;;  %1980 = vmatprep.subr.bf16.mxu0 %v2320_v24  ;;  %v575_v23 = vld [vmem:[#allocation9 + $0x1d8] sm:$0xff] }
 0x3a6   :  { %v579_v24 = vld [vmem:[#allocation9 + $0x1f8] sm:$0xff] }
 0x3a7   :  { %v2209_v35 = vcombine.low %v575_v23, %v579_v24 }
 0x3a8   :  { %1952 = vmatpush2.bf16.msra.mxu1 %v2271_v29  ;;  %1981 = vmatpush1.bf16.msra.mxu0 %v2319_v30  ;;  %v2210_v29 = vcombine.high %v575_v23, %v579_v24  ;;  %v2338_v30 = vcombine.high %v703_v25, %v707_v26 }
 0x3a9   :  { %1953 = vmatprep.subr.bf16.mxu1 %v2264_v31  ;;  %1982 = vmatprep.subr.bf16.mxu0 %v2312_v32  ;;  %v567_v31 = vld [vmem:[#allocation9 + $0x198] sm:$0xff] }
 0x3aa   :  { %v571_v32 = vld [vmem:[#allocation9 + $0x1b8] sm:$0xff] }
 0x3ab   :  { %v2201_v43 = vcombine.low %v567_v31, %v571_v32 }
 0x3ac   :  { %1954 = vmatpush2.bf16.msra.mxu1 %v2263_v37  ;;  %1983 = vmatpush1.bf16.msra.mxu0 %v2311_v38  ;;  %v2202_v37 = vcombine.high %v567_v31, %v571_v32  ;;  %v2330_v38 = vcombine.high %v695_v33, %v699_v34 }
 0x3ad   :  { %1955 = vmatprep.subr.bf16.mxu1 %v2256_v39  ;;  %1984 = vmatprep.subr.bf16.mxu0 %v2304_v40  ;;  %v559_v39 = vld [vmem:[#allocation9 + $0x158] sm:$0xff] }
 0x3ae   :  { %v563_v40 = vld [vmem:[#allocation9 + $0x178] sm:$0xff] }
 0x3af   :  { %v2193_v51 = vcombine.low %v559_v39, %v563_v40 }
 0x3b0   :  { %1956 = vmatpush2.bf16.msra.mxu1 %v2255_v45  ;;  %1985 = vmatpush1.bf16.msra.mxu0 %v2303_v46  ;;  %v2194_v45 = vcombine.high %v559_v39, %v563_v40  ;;  %v2322_v46 = vcombine.high %v687_v41, %v691_v42 }
 0x3b1   :  { %1957 = vmatprep.subr.bf16.mxu1 %v2248_v47  ;;  %1986 = vmatprep.subr.bf16.mxu0 %v2296_v48  ;;  %v551_v47 = vld [vmem:[#allocation9 + $0x118] sm:$0xff] }
 0x3b2   :  { %v555_v48 = vld [vmem:[#allocation9 + $0x138] sm:$0xff] }
 0x3b3   :  { %v2185_v57 = vcombine.low %v551_v47, %v555_v48 }
 0x3b4   :  { %1958 = vmatpush2.bf16.msra.mxu1 %v2247_v53  ;;  %1987 = vmatpush1.bf16.msra.mxu0 %v2295_v54  ;;  %v2314_v53 = vcombine.high %v679_v49, %v683_v50  ;;  %v543_v54 = vld [vmem:[#allocation9 + $0xd8] sm:$0xff] }
 0x3b5   :  { %1959 = vmatprep.subr.bf16.mxu1 %v2240_v55  ;;  %1988 = vmatprep.subr.bf16.mxu0 %v2288_v56  ;;  %v547_v55 = vld [vmem:[#allocation9 + $0xf8] sm:$0xff] }
 0x3b6   :  { %v675_v56 = vld [vmem:[#allocation9 + $0x4f8] sm:$0xff]  ;;  %v2178_v59 = vcombine.high %v543_v54, %v547_v55 }
 0x3b7   :  { %v619_v49 = vld [vmem:[#allocation9 + $0x338] sm:$0xff] }
 0x3b8   :  { %1960 = vmatpush2.bf16.msra.mxu1 %v2239_v3  ;;  %1989 = vmatpush1.bf16.msra.mxu0 %v2287_v4  ;;  %v539_v3 = vld [vmem:[#allocation9 + $0xb8] sm:$0xff] }
 0x3b9   :  { %1961 = vmatprep.subr.bf16.mxu1 %v2232_v5  ;;  %1990 = vmatprep.subr.bf16.mxu0 %v2280_v6  ;;  %v663_v4 = vld [vmem:[#allocation9 + $0x498] sm:$0xff]  ;;  %v2177_v6 = vcombine.low %v543_v54, %v547_v55  ;;  %v2170_v8 = vcombine.high %v535_v1, %v539_v3 }
 0x3ba   :  { %v667_v5 = vld [vmem:[#allocation9 + $0x4b8] sm:$0xff] }
 0x3bb   :  { %v2298_v9 = vcombine.high %v663_v4, %v667_v5  ;;  %v2297_v15 = vcombine.low %v663_v4, %v667_v5  ;;  %v599_v54 = vld [vmem:[#allocation9 + $0x298] sm:$0xff] }
 0x3bc   :  { %1962 = vmatpush2.bf16.msra.mxu1 %v2231_v10  ;;  %1991 = vmatpush1.bf16.msra.mxu0 %v2279_v11  ;;  %v527_v10 = vld [vmem:[#allocation9 + $0x58] sm:$0xff] }
 0x3bd   :  { %1963 = vmatprep.subr.bf16.mxu1 %v2224_v13  ;;  %2004 = vmatprep.subr.bf16.mxu0 %v1763_v14  ;;  %v531_v11 = vld [vmem:[#allocation9 + $0x78] sm:$0xff]  ;;  %v2169_v14 = vcombine.low %v535_v1, %v539_v3 }
 0x3be   :  { %v659_v13 = vld [vmem:[#allocation9 + $0x478] sm:$0xff]  ;;  %v2162_v16 = vcombine.high %v527_v10, %v531_v11  ;;  %v2161_v23 = vcombine.low %v527_v10, %v531_v11 }
 0x3bf   :  { %v2290_v17 = vcombine.high %v655_v12, %v659_v13  ;;  %v2289_v24 = vcombine.low %v655_v12, %v659_v13  ;;  %v603_v55 = vld [vmem:[#allocation9 + $0x2b8] sm:$0xff] }
 0x3c0   :  { %1964 = vmatpush2.bf16.msra.mxu1 %v2223_v19  ;;  %2005 = vmatpush2.bf16.msra.mxu0 %v1760_v20  ;;  %v523_v19 = vld [vmem:[#allocation9 + $0x38] sm:$0xff] }
 0x3c1   :  { %1965 = vmatprep.subr.bf16.mxu1 %v2216_v21  ;;  %2006 = vmatprep.subr.bf16.mxu0 %v2344_v22  ;;  %v647_v20 = vld [vmem:[#allocation9 + $0x418] sm:$0xff]  ;;  %v2154_v25 = vcombine.high %v519_v18, %v523_v19 }
 0x3c2   :  { %v651_v21 = vld [vmem:[#allocation9 + $0x438] sm:$0xff] }
 0x3c3   :  { %v719_v22 = vld [vmem:[#allocation9 + $0x658] sm:$0x11]  ;;  %v2282_v26 = vcombine.high %v647_v20, %v651_v21  ;;  %v2281_v31 = vcombine.low %v647_v20, %v651_v21 }
 0x3c4   :  { %1966 = vmatpush2.bf16.msra.mxu1 %v2215_v27  ;;  %2007 = vmatpush2.bf16.msra.mxu0 %v2343_v28  ;;  %v639_v27 = vld [vmem:[#allocation9 + $0x3d8] sm:$0xff]  ;;  %v2353_v33 = vcombine.low %v719_v22, %v719_v22 }
 0x3c5   :  { %2017 = vmatprep.subr.bf16.mxu0 %v2210_v29  ;;  %2058 = vmatprep.subr.bf16.mxu1 %v2338_v30  ;;  %v643_v28 = vld [vmem:[#allocation9 + $0x3f8] sm:$0xff]  ;;  %v2354_v29 = vcombine.high %v719_v22, %v719_v22  ;;  %v2153_v30 = vcombine.low %v519_v18, %v523_v19 }
 0x3c6   :  { %v2274_v32 = vcombine.high %v639_v27, %v643_v28  ;;  %v2273_v39 = vcombine.low %v639_v27, %v643_v28  ;;  %v1766_v40 = vand.u32 %v2353_v33, %v2642_v2  ;;  %v583_v1 = vld [vmem:[#allocation9 + $0x218] sm:$0xff] }
 0x3c7   :  { %1968 = vmatmul.mubr.bf16.vlgmr.msra.gmra.mxu1 %v2668_v63  ;;  %2009 = vmatmul.mubr.bf16.vlgmr.msra.gmra.mxu0 %v2670_v0  ;;  %v1769_v34 = vand.u32 %v2354_v29, %v2642_v2  ;;  %v607_v2 = vld [vmem:[#allocation9 + $0x2d8] sm:$0xff] }
 0x3c8   :  { %2018 = vmatpush1.bf16.msra.mxu0 %v2209_v35  ;;  %2049 = vmatprep.mubr.bf16.mxu0 %v2664_v61  ;;  %v2186_v61 = vcombine.high %v551_v47, %v555_v48  ;;  %v631_v35 = vld [vmem:[#allocation9 + $0x398] sm:$0xff] }
 0x3c9   :  { %2059 = vmatpush1.bf16.msra.mxu1 %v2337_v36  ;;  %2358 = vmatprep.mubr.msk.bf16.mxu1 %vm105_vm2, %v2666_v62  ;;  %v671_v62 = vld [vmem:[#allocation9 + $0x4d8] sm:$0xff] }
 0x3ca   :  { %2019 = vmatprep.subr.bf16.mxu0 %v2202_v37  ;;  %2060 = vmatprep.subr.bf16.mxu1 %v2330_v38  ;;  %v2306_v60 = vcombine.high %v671_v62, %v675_v56  ;;  %v2305_v7 = vcombine.low %v671_v62, %v675_v56  ;;  %v635_v36 = vld [vmem:[#allocation9 + $0x3b8] sm:$0xff]  ;;  %v2234_v56 = vcombine.high %v599_v54, %v603_v55 }
 0x3cb   :  { %v711_v37 = vld [vmem:[#allocation9 + $0x618] sm:$0xff]  ;;  %v2266_v41 = vcombine.high %v631_v35, %v635_v36 }
 0x3cc   :  { %2020 = vmatpush1.bf16.msra.mxu0 %v2201_v43  ;;  %v715_v38 = vld [vmem:[#allocation9 + $0x638] sm:$0xff] }
 0x3cd   :  { %2061 = vmatpush1.bf16.msra.mxu1 %v2329_v44  ;;  %2021 = vmatprep.subr.bf16.mxu0 %v2194_v45  ;;  %v2346_v42 = vcombine.high %v711_v37, %v715_v38  ;;  %v623_v43 = vld [vmem:[#allocation9 + $0x358] sm:$0xff]  ;;  %v2265_v45 = vcombine.low %v631_v35, %v635_v36 }
 0x3ce   :  { %2062 = vmatprep.subr.bf16.mxu1 %v2322_v46  ;;  %v627_v44 = vld [vmem:[#allocation9 + $0x378] sm:$0xff]  ;;  %v2345_v46 = vcombine.low %v711_v37, %v715_v38 }
 0x3cf   :  { %v2258_v47 = vcombine.high %v623_v43, %v627_v44  ;;  %v615_v48 = vld [vmem:[#allocation9 + $0x318] sm:$0xff]  ;;  %v2257_v50 = vcombine.low %v623_v43, %v627_v44 }
 0x3d0   :  { %2022 = vmatpush1.bf16.msra.mxu0 %v2193_v51  ;;  %v2250_v51 = vcombine.high %v615_v48, %v619_v49  ;;  %v587_v3 = vld [vmem:[#allocation9 + $0x238] sm:$0xff] }
 0x3d1   :  { %2063 = vmatpush1.bf16.msra.mxu1 %v2321_v52  ;;  %2023 = vmatprep.subr.bf16.mxu0 %v2186_v61  ;;  %v611_v52 = vld [vmem:[#allocation9 + $0x2f8] sm:$0xff]  ;;  %v2249_v61 = vcombine.low %v615_v48, %v619_v49  ;;  %v2218_v4 = vcombine.high %v583_v1, %v587_v3  ;;  %v2217_v5 = vcombine.low %v583_v1, %v587_v3 }
 0x3d2   :  { %2064 = vmatprep.subr.bf16.mxu1 %v2314_v53  ;;  %v2242_v53 = vcombine.high %v607_v2, %v611_v52  ;;  %v2241_v62 = vcombine.low %v607_v2, %v611_v52 }
 0x3d4   :  { %2024 = vmatpush1.bf16.msra.mxu0 %v2185_v57  ;;  %v591_v57 = vld [vmem:[#allocation9 + $0x258] sm:$0xff] }
 0x3d5   :  { %2065 = vmatpush1.bf16.msra.mxu1 %v2313_v58  ;;  %2025 = vmatprep.subr.bf16.mxu0 %v2178_v59  ;;  %v595_v58 = vld [vmem:[#allocation9 + $0x278] sm:$0xff]  ;;  %v2233_v59 = vcombine.low %v599_v54, %v603_v55 }
 0x3d6   :  { %2066 = vmatprep.subr.bf16.mxu1 %v2306_v60  ;;  %v2226_v60 = vcombine.high %v591_v57, %v595_v58 }
 0x3d8   :  { %2026 = vmatpush1.bf16.msra.mxu0 %v2177_v6 }
 0x3d9   :  { %2067 = vmatpush1.bf16.msra.mxu1 %v2305_v7  ;;  %2027 = vmatprep.subr.bf16.mxu0 %v2170_v8 }
 0x3da   :  { %2068 = vmatprep.subr.bf16.mxu1 %v2298_v9 }
 0x3dc   :  { %2028 = vmatpush1.bf16.msra.mxu0 %v2169_v14 }
 0x3dd   :  { %2069 = vmatpush1.bf16.msra.mxu1 %v2297_v15  ;;  %2029 = vmatprep.subr.bf16.mxu0 %v2162_v16 }
 0x3de   :  { %2070 = vmatprep.subr.bf16.mxu1 %v2290_v17 }
 0x3e0   :  { %2030 = vmatpush1.bf16.msra.mxu0 %v2161_v23 }
 0x3e1   :  { %2071 = vmatpush1.bf16.msra.mxu1 %v2289_v24  ;;  %2031 = vmatprep.subr.bf16.mxu0 %v2154_v25 }
 0x3e2   :  { %2072 = vmatprep.subr.bf16.mxu1 %v2282_v26 }
 0x3e4   :  { %2032 = vmatpush1.bf16.msra.mxu0 %v2153_v30 }
 0x3e5   :  { %2073 = vmatpush1.bf16.msra.mxu1 %v2281_v31  ;;  %2033 = vmatprep.subr.bf16.mxu0 %v2274_v32 }
 0x3e6   :  { %2086 = vmatprep.subr.bf16.mxu1 %v1769_v34 }
 0x3e8   :  { %2034 = vmatpush2.bf16.msra.mxu0 %v2273_v39 }
 0x3e9   :  { %2087 = vmatpush2.bf16.msra.mxu1 %v1766_v40  ;;  %2035 = vmatprep.subr.bf16.mxu0 %v2266_v41 }
 0x3ea   :  { %2088 = vmatprep.subr.bf16.mxu1 %v2346_v42 }
 0x3ec   :  { %2036 = vmatpush2.bf16.msra.mxu0 %v2265_v45 }
 0x3ed   :  { %2089 = vmatpush2.bf16.msra.mxu1 %v2345_v46  ;;  %2037 = vmatprep.subr.bf16.mxu0 %v2258_v47 }
 0x3f0   :  { %2091 = vmatmul.mubr.bf16.vlgmr.msra.gmra.mxu1 %v2670_v0  ;;  %2038 = vmatpush2.bf16.msra.mxu0 %v2257_v50  ;;  %v2225_v0 = vcombine.low %v591_v57, %v595_v58 }
 0x3f1   :  { %2039 = vmatprep.subr.bf16.mxu0 %v2250_v51 }
 0x3f4   :  { %2040 = vmatpush2.bf16.msra.mxu0 %v2249_v61 }
 0x3f5   :  { %2041 = vmatprep.subr.bf16.mxu0 %v2242_v53 }
 0x3f8   :  { %2042 = vmatpush2.bf16.msra.mxu0 %v2241_v62 }
 0x3f9   :  { %2043 = vmatprep.subr.bf16.mxu0 %v2234_v56 }
 0x3fc   :  { %2044 = vmatpush2.bf16.msra.mxu0 %v2233_v59 }
 0x3fd   :  { %2045 = vmatprep.subr.bf16.mxu0 %v2226_v60 }
 0x400   :  { %2046 = vmatpush2.bf16.msra.mxu0 %v2225_v0 }
 0x401   :  { %2047 = vmatprep.subr.bf16.mxu0 %v2218_v4 }
 0x404   :  { %2048 = vmatpush2.bf16.msra.mxu0 %v2217_v5 }
 0x407   :  { %2050 = vmatmul.mubr.bf16.vlgmr.msra.gmra.mxu0 %v2668_v63 }
 0x41f   :  { %v1805_v6 = vpop.f32.mrf.mxu1  ;;  %v1846_v7 = vpop.f32.mrf.mxu0 }
 0x420   :  { %v1847_v8 = vadd.f32 %v1846_v7, %v1805_v6 }
 0x421   :  { %v1807_v9 = vpop.f32.mrf.mxu1  ;;  %v1848_v10 = vpop.f32.mrf.mxu0 }
 0x422   :  { %2099 = vst [vmem:[%s2728_s6] sm:$0xff] %v1847_v8  ;;  %v1849_v11 = vadd.f32 %v1848_v10, %v1807_v9 }
 0x423   :  { %v1809_v12 = vpop.f32.mrf.mxu1  ;;  %v1850_v13 = vpop.f32.mrf.mxu0 }
 0x424   :  { %2100 = vst [vmem:[%s2728_s6 + $0x8] sm:$0xff] %v1849_v11 }
 0x425   :  { %v1810_v14 = vpop.f32.mrf.mxu1  ;;  %v1851_v15 = vpop.f32.mrf.mxu0 }
 0x447   :  { %v1928_v16 = vpop.f32.mrf.mxu1 }
 0x449   :  { %v1930_v63 = vpop.f32.mrf.mxu1 }
 0x44b   :  { %v1932_v17 = vpop.f32.mrf.mxu1 }
 0x44d   :  { %v1933_v18 = vpop.f32.mrf.mxu1 }
 0x45f   :  { %v1887_v19 = vpop.f32.mrf.mxu0 }
 0x460   :  { %v1929_v20 = vadd.f32 %v1928_v16, %v1887_v19 }
 0x461   :  { %v1889_v21 = vpop.f32.mrf.mxu0 }
 0x462   :  { %2101 = vst [vmem:[%s2728_s6 + $0x10] sm:$0xff] %v1929_v20  ;;  %v1931_v22 = vadd.f32 %v1930_v63, %v1889_v21 }
 0x463   :  { %v1891_v23 = vpop.f32.mrf.mxu0 }
 0x464   :  { %2102 = vst [vmem:[%s2728_s6 + $0x18] sm:$0xff] %v1931_v22 }
 0x465   :  { %v1892_v24 = vpop.f32.mrf.mxu0 }
 0x487   :  { %v1969_v25 = vpop.f32.mrf.mxu1  ;;  %v2010_v26 = vpop.f32.mrf.mxu0 }
 0x488   :  { %v2011_v27 = vadd.f32 %v2010_v26, %v1969_v25 }
 0x489   :  { %v1971_v28 = vpop.f32.mrf.mxu1  ;;  %v2012_v29 = vpop.f32.mrf.mxu0 }
 0x48a   :  { %2103 = vst [vmem:[%s2728_s6 + $0x20] sm:$0xff] %v2011_v27  ;;  %v2013_v30 = vadd.f32 %v2012_v29, %v1971_v28 }
 0x48b   :  { %v1973_v31 = vpop.f32.mrf.mxu1  ;;  %v2014_v32 = vpop.f32.mrf.mxu0 }
 0x48c   :  { %2104 = vst [vmem:[%s2728_s6 + $0x28] sm:$0xff] %v2013_v30 }
 0x48d   :  { %v1974_v33 = vpop.f32.mrf.mxu1  ;;  %v2015_v34 = vpop.f32.mrf.mxu0 }
 0x4b0   :  { %v2092_v35 = vpop.f32.mrf.mxu1 }
 0x4b2   :  { %v2094_v36 = vpop.f32.mrf.mxu1 }
 0x4b4   :  { %v2096_v37 = vpop.f32.mrf.mxu1 }
 0x4b6   :  { %v2097_v38 = vpop.f32.mrf.mxu1 }
 0x4c7   :  { %v2051_v39 = vpop.f32.mrf.mxu0 }
 0x4c8   :  { %v2093_v40 = vadd.f32 %v2092_v35, %v2051_v39 }
 0x4c9   :  { %v2053_v41 = vpop.f32.mrf.mxu0 }
 0x4ca   :  { %2105 = vst [vmem:[%s2728_s6 + $0x30] sm:$0xff] %v2093_v40  ;;  %v2095_v42 = vadd.f32 %v2094_v36, %v2053_v41 }
 0x4cb   :  { %v2055_v43 = vpop.f32.mrf.mxu0 }
 0x4cc   :  { %2106 = vst [vmem:[%s2728_s6 + $0x38] sm:$0xff] %v2095_v42 }
 0x4cd   :  { %v2056_v44 = vpop.f32.mrf.mxu0 }
 0x4ce   :  { %2111 = vsyncpa [#allocation3], 1 }
 0x4cf   :  { %2112 = vsyncpa [#allocation5], 1 }
 0x4d0   :  { %2113 = vsyncpa [#allocation8], 1 }

</bundles_post_ra>
